<compile_context>
chip_gen: v5e
topology: v5e:2x2
jax: 0.10.0
libtpu: 0.0.40
codegen_flags: <defaults>
</compile_context>

<pallas_src>
import functools

import jax
import jax.numpy as jnp
from jax.experimental import pallas as pl
from jax.experimental.pallas import tpu as pltpu


# ------------------------------- helpers ------------------------------------


def _vmem_limit_bytes(io_block_bytes, scratch_bytes=0):
    """Per-call VMEM limit from the actual footprint.

    2x the I/O blocks (double-buffered pipelining) + scratch, generous headroom for
    compiler-internal scratch, capped below the chip's physical VMEM (no fixed 48 MiB:
    too tight on v7x's 64 MiB/TC, needlessly small on v5e/v6e's 128 MiB).
    """
    need = 2 * io_block_bytes + scratch_bytes
    cap = 64 << 20                               # conservative fallback (v7x per-core VMEM)
    try:
        cap = int(getattr(pltpu.get_tpu_info(), "vmem_capacity_bytes", cap) or cap)
    except Exception:
        pass
    limit = min(2 * need + (16 << 20), (cap * 3) // 4)
    return int(max(limit, need + (2 << 20), 32 << 20))


# ----------------------------- Pallas kernels --------------------------------


def _conv_relu_stats_kernel(x_ref, w_ref, b_ref, y_ref, stats_ref, xpad_ref, patches_ref,
                            *, kh, kw, stride, pad, oh, ow):
    """Conv (single-dot in-kernel im2col) + bias + ReLU for one image + partial BN stats.

    x_ref:       (H, W, Cin)          un-padded NHWC image (f32)
    w_ref:       (Cout, KH*KW*Cin)    conv weight, tap-major columns (bf16)
    b_ref:       (Cout, 1)            conv bias (f32)
    y_ref:       (Cout, OH*OW)        relu(conv(x) + b), NCHW-flat (f32, lane-dense)
    stats_ref:   (Cout, 2)            per-image partial [sum, sum-of-squares]
    xpad_ref:    (HP, WP, Cin)        VMEM scratch: zero-padded image (f32)
    patches_ref: (OH*OW, KH*KW*Cin)   VMEM scratch: im2col patches (bf16, never in HBM)
    """
    h, w, cin = x_ref.shape
    m = oh * ow

    # In-kernel zero padding (replaces the host-side jnp.pad HBM pass).
    if pad > 0:
        xpad_ref[...] = jnp.zeros_like(xpad_ref)
    xpad_ref[pl.ds(pad, h), pl.ds(pad, w), :] = x_ref[...]

    # In-kernel im2col, staged straight into a VMEM scratch as the bf16 MXU operand.
    t = 0
    for i in range(kh):                          # static unroll over taps
        for j in range(kw):
            if stride == 1:
                tap = xpad_ref[pl.ds(i, oh), pl.ds(j, ow), :]
            else:
                # TODO(synk): strided minor-dim slices cost per-tap relayout work;
                # pre-factor the input for common strides if strided convs matter.
                tap = xpad_ref[pl.ds(i, oh, stride), pl.ds(j, ow, stride), :]
            patches_ref[:, pl.ds(t * cin, cin)] = (
                tap.reshape(m, cin).astype(patches_ref.dtype))
            t += 1

    # One MXU contraction, K = KH*KW*Cin, NT form -> accumulator is (Cout, OH*OW):
    # lanes carry the spatial dim, so everything downstream is lane-dense.
    acc = jax.lax.dot_general(
        w_ref[...], patches_ref[...],
        dimension_numbers=(((1,), (1,)), ((), ())),
        preferred_element_type=jnp.float32)                       # (Cout, M) f32
    y = jnp.maximum(acc + b_ref[...], 0.0)
    y_ref[...] = y.astype(y_ref.dtype)

    # Partial batch-norm statistics as lane (XLU) reductions; reduced over N on the host
    # so the grid axis stays "parallel".  (Two 1-lane stores: negligible.)
    stats_ref[:, 0:1] = jnp.sum(y, axis=1, keepdims=True)
    stats_ref[:, 1:2] = jnp.sum(y * y, axis=1, keepdims=True)


def _bn_apply_kernel(y_ref, scale_ref, shift_ref, o_ref):
    """Per-row (= per image x channel) affine on lane-dense rows: o = y*scale + shift."""
    o_ref[...] = (y_ref[...] * scale_ref[...] + shift_ref[...]).astype(o_ref.dtype)


# ------------------------------- host wrapper --------------------------------


def conv_relu_bn(x_nchw, conv_w, conv_b, bn_gamma, bn_beta, *, stride=1, padding=0,
                 eps=1e-5):
    """Forward of ConvReLUBN.  x_nchw: (N, Cin, H, W); conv_w: (Cout, Cin, KH, KW)."""
    n, cin, h, w = x_nchw.shape
    cout, cin_w, kh, kw = conv_w.shape
    assert cin == cin_w

    if isinstance(padding, str):
        p = padding.lower()
        if p == "valid":
            padding = 0
        elif p == "same":
            assert stride == 1 and kh % 2 == 1 and kw % 2 == 1
            padding = (kh - 1) // 2
        else:
            raise ValueError(f"unsupported padding: {padding}")
    pad = int(padding)

    oh = (h + 2 * pad - kh) // stride + 1
    ow = (w + 2 * pad - kw) // stride + 1
    m_img = oh * ow
    m_total = n * m_img
    hp, wp = h + 2 * pad, w + 2 * pad
    kdim = kh * kw * cin

    # ---- glue (cheap): input NCHW -> NHWC; weight/bias relayout (tiny) ----
    x_nhwc = jnp.transpose(x_nchw.astype(jnp.float32), (0, 2, 3, 1))
    # (Cout, Cin, KH, KW) -> (Cout, KH*KW*Cin): columns ordered (i*KW + j)*Cin + c,
    # matching the in-kernel tap staging order.  bf16 MXU operand.
    w2 = jnp.transpose(conv_w, (0, 2, 3, 1)).reshape(cout, kdim).astype(jnp.bfloat16)
    b2 = conv_b.reshape(cout, 1).astype(jnp.float32)

    # ---- Kernel 1: conv (single-dot im2col) + bias + ReLU + per-image partial stats ----
    io_bytes1 = (h * w * cin * 4) + (cout * kdim * 2) + (cout * 4) \
                + (cout * m_img * 4) + (cout * 2 * 4)
    scratch_bytes1 = (hp * wp * cin * 4) + (m_img * kdim * 2)
    kernel1 = functools.partial(_conv_relu_stats_kernel,
                                kh=kh, kw=kw, stride=stride, pad=pad, oh=oh, ow=ow)
    y, stats = pl.pallas_call(
        kernel1,
        out_shape=(
            jax.ShapeDtypeStruct((n, cout, m_img), jnp.float32),
            jax.ShapeDtypeStruct((n, cout, 2), jnp.float32),
        ),
        grid_spec=pltpu.PrefetchScalarGridSpec(
            num_scalar_prefetch=0,
            grid=(n,),
            in_specs=[
                pl.BlockSpec((None, h, w, cin), lambda b: (b, 0, 0, 0)),
                pl.BlockSpec((cout, kdim), lambda b: (0, 0)),
                pl.BlockSpec((cout, 1), lambda b: (0, 0)),
            ],
            out_specs=[
                pl.BlockSpec((None, cout, m_img), lambda b: (b, 0, 0)),
                pl.BlockSpec((None, cout, 2), lambda b: (b, 0, 0)),
            ],
            scratch_shapes=[
                pltpu.VMEM((hp, wp, cin), jnp.float32),      # padded image
                pltpu.VMEM((m_img, kdim), jnp.bfloat16),     # im2col patches
            ],
        ),
        compiler_params=pltpu.CompilerParams(
            dimension_semantics=("parallel",),
            vmem_limit_bytes=_vmem_limit_bytes(io_bytes1, scratch_bytes1),
        ),
    )(x_nhwc, w2, b2)

    # ---- glue (tiny): reduce partial stats, fold BN into one scale/shift per channel ----
    stats_sum = jnp.sum(stats, axis=0)                         # (Cout, 2)
    mean = stats_sum[:, 0] / m_total
    # Clamp: E[y^2] - E[y]^2 can go slightly negative from cancellation (review note).
    var = jnp.maximum(stats_sum[:, 1] / m_total - mean * mean, 0.0)
    scale = bn_gamma * jax.lax.rsqrt(var + eps)
    shift = bn_beta - mean * scale

    # ---- Kernel 2: lane-dense per-(image, channel)-row affine, in place over y ----
    rows, cols = n * cout, m_img
    y2 = y.reshape(rows, cols)                                 # free row-major view
    scale_rows = jnp.tile(scale, n).reshape(rows, 1).astype(jnp.float32)
    shift_rows = jnp.tile(shift, n).reshape(rows, 1).astype(jnp.float32)

    # Large lane-dense tiles (amortize per-step overhead; unmasked vst when cols%128==0).
    tc = 4096 if (cols > 4096 and cols % 128 == 0) else cols
    max_tr = max(8, (8 << 20) // (tc * 4))
    tr = rows if rows <= max_tr else (max_tr // 8) * 8
    io_bytes2 = 2 * tr * tc * 4 + 2 * tr * 4

    out2 = pl.pallas_call(
        _bn_apply_kernel,
        out_shape=jax.ShapeDtypeStruct((rows, cols), jnp.float32),
        grid_spec=pltpu.PrefetchScalarGridSpec(
            num_scalar_prefetch=0,
            grid=(pl.cdiv(rows, tr), pl.cdiv(cols, tc)),
            in_specs=[
                pl.BlockSpec((tr, tc), lambda i, j: (i, j)),
                pl.BlockSpec((tr, 1), lambda i, j: (i, 0)),
                pl.BlockSpec((tr, 1), lambda i, j: (i, 0)),
            ],
            out_specs=pl.BlockSpec((tr, tc), lambda i, j: (i, j)),
        ),
        compiler_params=pltpu.CompilerParams(
            dimension_semantics=("parallel", "parallel"),
            vmem_limit_bytes=_vmem_limit_bytes(io_bytes2),
        ),
        input_output_aliases={0: 0},                           # overwrite y in place
    )(y2, scale_rows, shift_rows)

    # Output is already NCHW-flat: free reshape, no final transpose.
    return out2.reshape(n, cout, oh, ow)


# -------------------------------- reference ----------------------------------


def conv_relu_bn_ref(x_nchw, conv_w, conv_b, bn_gamma, bn_beta, *, stride, padding,
                     eps=1e-5):
    """Independent reference: XLA conv + ReLU + training-mode BatchNorm (batch stats)."""
    y = jax.lax.conv_general_dilated(
        x_nchw, conv_w,
        window_strides=(stride, stride),
        padding=[(padding, padding), (padding, padding)],
        dimension_numbers=("NCHW", "OIHW", "NCHW"),
        precision=jax.lax.Precision.HIGHEST)
    y = y + conv_b[None, :, None, None]
    y = jnp.maximum(y, 0.0)
    mean = jnp.mean(y, axis=(0, 2, 3), keepdims=True)
    var = jnp.mean((y - mean) ** 2, axis=(0, 2, 3), keepdims=True)   # biased
    y = (y - mean) * jax.lax.rsqrt(var + eps)
    return y * bn_gamma[None, :, None, None] + bn_beta[None, :, None, None]


# ----------------------------------- main ------------------------------------


if __name__ == "__main__":
    # ConvReLUBN(in_channels=4, out_channels=8, kernel_size=3, stride=1, padding=1)
    N, CIN, H, W = 2, 4, 16, 16
    COUT, KSIZE, STRIDE, PAD = 8, 3, 1, 1

    key = jax.random.PRNGKey(0)
    k_x, k_w, k_b, k_g, k_bt = jax.random.split(key, 5)

    x = jax.random.normal(k_x, (N, CIN, H, W), dtype=jnp.float32)
    conv_w = 0.1 * jax.random.normal(k_w, (COUT, CIN, KSIZE, KSIZE), dtype=jnp.float32)
    conv_b = 0.1 * jax.random.normal(k_b, (COUT,), dtype=jnp.float32)
    bn_gamma = 1.0 + 0.1 * jax.random.normal(k_g, (COUT,), dtype=jnp.float32)
    bn_beta = 0.1 * jax.random.normal(k_bt, (COUT,), dtype=jnp.float32)

    fwd = jax.jit(functools.partial(conv_relu_bn, stride=STRIDE, padding=PAD))
    out = fwd(x, conv_w, conv_b, bn_gamma, bn_beta)
    out = jax.block_until_ready(out)

    ref = conv_relu_bn_ref(x, conv_w, conv_b, bn_gamma, bn_beta,
                           stride=STRIDE, padding=PAD)

    assert out.shape == (N, COUT, H, W), out.shape
    max_err = float(jnp.max(jnp.abs(out - ref)))
    # bf16 MXU operands with f32 accumulation -> slightly looser tolerance than pure f32.
    assert jnp.allclose(out, ref, atol=2e-2, rtol=2e-2), max_err

    print("KERNEL_OK")
</pallas_src>

<mosaic_0001>
module attributes {stable_mosaic.version = 11 : i64} {
  func.func @_conv_relu_stats_kernel(%arg0: i32, %arg1: memref<1x16x16x4xf32, #tpu.memory_space<vmem>>, %arg2: memref<8x36xbf16, #tpu.memory_space<vmem>>, %arg3: memref<8x1xf32, #tpu.memory_space<vmem>>, %arg4: memref<1x8x256xf32, #tpu.memory_space<vmem>>, %arg5: memref<1x8x2xf32, #tpu.memory_space<vmem>>, %arg6: memref<18x18x4xf32, #tpu.memory_space<vmem>>, %arg7: memref<256x36xbf16, #tpu.memory_space<vmem>>) attributes {dimension_semantics = [#tpu.dimension_semantics<parallel>], iteration_bounds = array<i64: 2>, scalar_prefetch = 0 : i64, scratch_operands = 2 : i64, tpu.core_type = #tpu.core_type<tc>, window_params = [{transform_indices = @transform_0, window_bounds = array<i64: 1, 16, 16, 4>}, {pipeline_mode = #tpu.pipeline_mode<synchronous>, transform_indices = @transform_1, window_bounds = array<i64: 8, 36>}, {pipeline_mode = #tpu.pipeline_mode<synchronous>, transform_indices = @transform_2, window_bounds = array<i64: 8, 1>}, {transform_indices = @transform_3, window_bounds = array<i64: 1, 8, 256>}, {transform_indices = @transform_4, window_bounds = array<i64: 1, 8, 2>}]} {
    %cst = arith.constant 0.000000e+00 : f32
    %0 = vector.broadcast %cst : f32 to vector<18x18x4xf32>
    %c0 = arith.constant 0 : index
    %c0_0 = arith.constant 0 : index
    %c0_1 = arith.constant 0 : index
    %1 = vector.load %arg6[%c0, %c0_0, %c0_1] : memref<18x18x4xf32, #tpu.memory_space<vmem>>, vector<18x18x4xf32>
    tpu.vector_store %arg6[%c0, %c0_0, %c0_1], %0 {strides = array<i32>} : memref<18x18x4xf32, #tpu.memory_space<vmem>>, vector<18x18x4xf32>,
    %c0_2 = arith.constant 0 : index
    %c0_3 = arith.constant 0 : index
    %c0_4 = arith.constant 0 : index
    %c0_5 = arith.constant 0 : index
    %2 = vector.load %arg1[%c0_2, %c0_3, %c0_4, %c0_5] : memref<1x16x16x4xf32, #tpu.memory_space<vmem>>, vector<1x16x16x4xf32>
    %3 = vector.shape_cast %2 : vector<1x16x16x4xf32> to vector<16x16x4xf32>
    %c1 = arith.constant 1 : index
    %c1_6 = arith.constant 1 : index
    %c0_7 = arith.constant 0 : index
    %4 = vector.load %arg6[%c1, %c1_6, %c0_7] : memref<18x18x4xf32, #tpu.memory_space<vmem>>, vector<16x16x4xf32>
    tpu.vector_store %arg6[%c1, %c1_6, %c0_7], %3 {strides = array<i32>} : memref<18x18x4xf32, #tpu.memory_space<vmem>>, vector<16x16x4xf32>,
    %c0_8 = arith.constant 0 : index
    %c0_9 = arith.constant 0 : index
    %c0_10 = arith.constant 0 : index
    %5 = vector.load %arg6[%c0_8, %c0_9, %c0_10] : memref<18x18x4xf32, #tpu.memory_space<vmem>>, vector<16x16x4xf32>
    %6 = vector.shape_cast %5 : vector<16x16x4xf32> to vector<256x4xf32>
    %7 = arith.truncf %6 : vector<256x4xf32> to vector<256x4xbf16>
    %c0_11 = arith.constant 0 : index
    %c0_12 = arith.constant 0 : index
    %8 = vector.load %arg7[%c0_11, %c0_12] : memref<256x36xbf16, #tpu.memory_space<vmem>>, vector<256x4xbf16>
    tpu.vector_store %arg7[%c0_11, %c0_12], %7 {strides = array<i32>} : memref<256x36xbf16, #tpu.memory_space<vmem>>, vector<256x4xbf16>,
    %c0_13 = arith.constant 0 : index
    %c1_14 = arith.constant 1 : index
    %c0_15 = arith.constant 0 : index
    %9 = vector.load %arg6[%c0_13, %c1_14, %c0_15] : memref<18x18x4xf32, #tpu.memory_space<vmem>>, vector<16x16x4xf32>
    %10 = vector.shape_cast %9 : vector<16x16x4xf32> to vector<256x4xf32>
    %11 = arith.truncf %10 : vector<256x4xf32> to vector<256x4xbf16>
    %c0_16 = arith.constant 0 : index
    %c4 = arith.constant 4 : index
    %12 = vector.load %arg7[%c0_16, %c4] : memref<256x36xbf16, #tpu.memory_space<vmem>>, vector<256x4xbf16>
    tpu.vector_store %arg7[%c0_16, %c4], %11 {strides = array<i32>} : memref<256x36xbf16, #tpu.memory_space<vmem>>, vector<256x4xbf16>,
    %c0_17 = arith.constant 0 : index
    %c2 = arith.constant 2 : index
    %c0_18 = arith.constant 0 : index
    %13 = vector.load %arg6[%c0_17, %c2, %c0_18] : memref<18x18x4xf32, #tpu.memory_space<vmem>>, vector<16x16x4xf32>
    %14 = vector.shape_cast %13 : vector<16x16x4xf32> to vector<256x4xf32>
    %15 = arith.truncf %14 : vector<256x4xf32> to vector<256x4xbf16>
    %c0_19 = arith.constant 0 : index
    %c8 = arith.constant 8 : index
    %16 = vector.load %arg7[%c0_19, %c8] : memref<256x36xbf16, #tpu.memory_space<vmem>>, vector<256x4xbf16>
    tpu.vector_store %arg7[%c0_19, %c8], %15 {strides = array<i32>} : memref<256x36xbf16, #tpu.memory_space<vmem>>, vector<256x4xbf16>,
    %c1_20 = arith.constant 1 : index
    %c0_21 = arith.constant 0 : index
    %c0_22 = arith.constant 0 : index
    %17 = vector.load %arg6[%c1_20, %c0_21, %c0_22] : memref<18x18x4xf32, #tpu.memory_space<vmem>>, vector<16x16x4xf32>
    %18 = vector.shape_cast %17 : vector<16x16x4xf32> to vector<256x4xf32>
    %19 = arith.truncf %18 : vector<256x4xf32> to vector<256x4xbf16>
    %c0_23 = arith.constant 0 : index
    %c12 = arith.constant 12 : index
    %20 = vector.load %arg7[%c0_23, %c12] : memref<256x36xbf16, #tpu.memory_space<vmem>>, vector<256x4xbf16>
    tpu.vector_store %arg7[%c0_23, %c12], %19 {strides = array<i32>} : memref<256x36xbf16, #tpu.memory_space<vmem>>, vector<256x4xbf16>,
    %c1_24 = arith.constant 1 : index
    %c1_25 = arith.constant 1 : index
    %c0_26 = arith.constant 0 : index
    %21 = vector.load %arg6[%c1_24, %c1_25, %c0_26] : memref<18x18x4xf32, #tpu.memory_space<vmem>>, vector<16x16x4xf32>
    %22 = vector.shape_cast %21 : vector<16x16x4xf32> to vector<256x4xf32>
    %23 = arith.truncf %22 : vector<256x4xf32> to vector<256x4xbf16>
    %c0_27 = arith.constant 0 : index
    %c16 = arith.constant 16 : index
    %24 = vector.load %arg7[%c0_27, %c16] : memref<256x36xbf16, #tpu.memory_space<vmem>>, vector<256x4xbf16>
    tpu.vector_store %arg7[%c0_27, %c16], %23 {strides = array<i32>} : memref<256x36xbf16, #tpu.memory_space<vmem>>, vector<256x4xbf16>,
    %c1_28 = arith.constant 1 : index
    %c2_29 = arith.constant 2 : index
    %c0_30 = arith.constant 0 : index
    %25 = vector.load %arg6[%c1_28, %c2_29, %c0_30] : memref<18x18x4xf32, #tpu.memory_space<vmem>>, vector<16x16x4xf32>
    %26 = vector.shape_cast %25 : vector<16x16x4xf32> to vector<256x4xf32>
    %27 = arith.truncf %26 : vector<256x4xf32> to vector<256x4xbf16>
    %c0_31 = arith.constant 0 : index
    %c20 = arith.constant 20 : index
    %28 = vector.load %arg7[%c0_31, %c20] : memref<256x36xbf16, #tpu.memory_space<vmem>>, vector<256x4xbf16>
    tpu.vector_store %arg7[%c0_31, %c20], %27 {strides = array<i32>} : memref<256x36xbf16, #tpu.memory_space<vmem>>, vector<256x4xbf16>,
    %c2_32 = arith.constant 2 : index
    %c0_33 = arith.constant 0 : index
    %c0_34 = arith.constant 0 : index
    %29 = vector.load %arg6[%c2_32, %c0_33, %c0_34] : memref<18x18x4xf32, #tpu.memory_space<vmem>>, vector<16x16x4xf32>
    %30 = vector.shape_cast %29 : vector<16x16x4xf32> to vector<256x4xf32>
    %31 = arith.truncf %30 : vector<256x4xf32> to vector<256x4xbf16>
    %c0_35 = arith.constant 0 : index
    %c24 = arith.constant 24 : index
    %32 = vector.load %arg7[%c0_35, %c24] : memref<256x36xbf16, #tpu.memory_space<vmem>>, vector<256x4xbf16>
    tpu.vector_store %arg7[%c0_35, %c24], %31 {strides = array<i32>} : memref<256x36xbf16, #tpu.memory_space<vmem>>, vector<256x4xbf16>,
    %c2_36 = arith.constant 2 : index
    %c1_37 = arith.constant 1 : index
    %c0_38 = arith.constant 0 : index
    %33 = vector.load %arg6[%c2_36, %c1_37, %c0_38] : memref<18x18x4xf32, #tpu.memory_space<vmem>>, vector<16x16x4xf32>
    %34 = vector.shape_cast %33 : vector<16x16x4xf32> to vector<256x4xf32>
    %35 = arith.truncf %34 : vector<256x4xf32> to vector<256x4xbf16>
    %c0_39 = arith.constant 0 : index
    %c28 = arith.constant 28 : index
    %36 = vector.load %arg7[%c0_39, %c28] : memref<256x36xbf16, #tpu.memory_space<vmem>>, vector<256x4xbf16>
    tpu.vector_store %arg7[%c0_39, %c28], %35 {strides = array<i32>} : memref<256x36xbf16, #tpu.memory_space<vmem>>, vector<256x4xbf16>,
    %c2_40 = arith.constant 2 : index
    %c2_41 = arith.constant 2 : index
    %c0_42 = arith.constant 0 : index
    %37 = vector.load %arg6[%c2_40, %c2_41, %c0_42] : memref<18x18x4xf32, #tpu.memory_space<vmem>>, vector<16x16x4xf32>
    %38 = vector.shape_cast %37 : vector<16x16x4xf32> to vector<256x4xf32>
    %39 = arith.truncf %38 : vector<256x4xf32> to vector<256x4xbf16>
    %c0_43 = arith.constant 0 : index
    %c32 = arith.constant 32 : index
    %40 = vector.load %arg7[%c0_43, %c32] : memref<256x36xbf16, #tpu.memory_space<vmem>>, vector<256x4xbf16>
    tpu.vector_store %arg7[%c0_43, %c32], %39 {strides = array<i32>} : memref<256x36xbf16, #tpu.memory_space<vmem>>, vector<256x4xbf16>,
    %c0_44 = arith.constant 0 : index
    %c0_45 = arith.constant 0 : index
    %41 = vector.load %arg2[%c0_44, %c0_45] : memref<8x36xbf16, #tpu.memory_space<vmem>>, vector<8x36xbf16>
    %c0_46 = arith.constant 0 : index
    %c0_47 = arith.constant 0 : index
    %42 = vector.load %arg7[%c0_46, %c0_47] : memref<256x36xbf16, #tpu.memory_space<vmem>>, vector<256x36xbf16>
    %cst_48 = arith.constant dense<0.000000e+00> : vector<8x256xf32>
    %43 = tpu.matmul %41, %42, %cst_48 {dimension_numbers = #tpu.dot_dimension_numbers<[1], [1], [0], [0], [0, 0, 1, 0], [], []>} : vector<8x36xbf16>, vector<256x36xbf16>, vector<8x256xf32> -> vector<8x256xf32>
    %c0_49 = arith.constant 0 : index
    %c0_50 = arith.constant 0 : index
    %44 = vector.load %arg3[%c0_49, %c0_50] : memref<8x1xf32, #tpu.memory_space<vmem>>, vector<8x1xf32>
    %45 = vector.broadcast %44 : vector<8x1xf32> to vector<8x256xf32>
    %46 = arith.addf %43, %45 : vector<8x256xf32>
    %cst_51 = arith.constant 0.000000e+00 : f32
    %47 = vector.broadcast %cst_51 : f32 to vector<8x256xf32>
    %48 = arith.maximumf %46, %47 : vector<8x256xf32>
    %c0_52 = arith.constant 0 : index
    %c0_53 = arith.constant 0 : index
    %c0_54 = arith.constant 0 : index
    %49 = vector.load %arg4[%c0_52, %c0_53, %c0_54] : memref<1x8x256xf32, #tpu.memory_space<vmem>>, vector<1x8x256xf32>
    %50 = vector.shape_cast %49 : vector<1x8x256xf32> to vector<8x256xf32>
    %51 = vector.shape_cast %48 : vector<8x256xf32> to vector<1x8x256xf32>
    tpu.vector_store %arg4[%c0_52, %c0_53, %c0_54], %51 {strides = array<i32>} : memref<1x8x256xf32, #tpu.memory_space<vmem>>, vector<1x8x256xf32>,
    %cst_55 = arith.constant dense<0.000000e+00> : vector<8xf32>
    %52 = vector.multi_reduction <add>, %48, %cst_55 [1] : vector<8x256xf32> to vector<8xf32>
    %53 = vector.shape_cast %52 : vector<8xf32> to vector<8x1xf32>
    %c0_56 = arith.constant 0 : index
    %c0_57 = arith.constant 0 : index
    %c0_58 = arith.constant 0 : index
    %54 = vector.load %arg5[%c0_56, %c0_57, %c0_58] : memref<1x8x2xf32, #tpu.memory_space<vmem>>, vector<1x8x1xf32>
    %55 = vector.shape_cast %54 : vector<1x8x1xf32> to vector<8x1xf32>
    %56 = vector.shape_cast %53 : vector<8x1xf32> to vector<1x8x1xf32>
    tpu.vector_store %arg5[%c0_56, %c0_57, %c0_58], %56 {strides = array<i32>} : memref<1x8x2xf32, #tpu.memory_space<vmem>>, vector<1x8x1xf32>,
    %57 = arith.mulf %48, %48 : vector<8x256xf32>
    %cst_59 = arith.constant dense<0.000000e+00> : vector<8xf32>
    %58 = vector.multi_reduction <add>, %57, %cst_59 [1] : vector<8x256xf32> to vector<8xf32>
    %59 = vector.shape_cast %58 : vector<8xf32> to vector<8x1xf32>
    %c0_60 = arith.constant 0 : index
    %c0_61 = arith.constant 0 : index
    %c1_62 = arith.constant 1 : index
    %60 = vector.load %arg5[%c0_60, %c0_61, %c1_62] : memref<1x8x2xf32, #tpu.memory_space<vmem>>, vector<1x8x1xf32>
    %61 = vector.shape_cast %60 : vector<1x8x1xf32> to vector<8x1xf32>
    %62 = vector.shape_cast %59 : vector<8x1xf32> to vector<1x8x1xf32>
    tpu.vector_store %arg5[%c0_60, %c0_61, %c1_62], %62 {strides = array<i32>} : memref<1x8x2xf32, #tpu.memory_space<vmem>>, vector<1x8x1xf32>,
    return
  }
  func.func @transform_0(%arg0: i32) -> (i32, i32, i32, i32) {
    %c0_i32 = arith.constant 0 : i32
    %c0_i32_0 = arith.constant 0 : i32
    %c0_i32_1 = arith.constant 0 : i32
    %c0_i32_2 = arith.constant 0 : i32
    return %arg0, %c0_i32, %c0_i32_0, %c0_i32_1 : i32, i32, i32, i32
  }
  func.func @transform_1(%arg0: i32) -> (i32, i32) {
    %c0_i32 = arith.constant 0 : i32
    %c0_i32_0 = arith.constant 0 : i32
    %c0_i32_1 = arith.constant 0 : i32
    return %c0_i32, %c0_i32_0 : i32, i32
  }
  func.func @transform_2(%arg0: i32) -> (i32, i32) {
    %c0_i32 = arith.constant 0 : i32
    %c0_i32_0 = arith.constant 0 : i32
    %c0_i32_1 = arith.constant 0 : i32
    return %c0_i32, %c0_i32_0 : i32, i32
  }
  func.func @transform_3(%arg0: i32) -> (i32, i32, i32) {
    %c0_i32 = arith.constant 0 : i32
    %c0_i32_0 = arith.constant 0 : i32
    %c0_i32_1 = arith.constant 0 : i32
    return %arg0, %c0_i32, %c0_i32_0 : i32, i32, i32
  }
  func.func @transform_4(%arg0: i32) -> (i32, i32, i32) {
    %c0_i32 = arith.constant 0 : i32
    %c0_i32_0 = arith.constant 0 : i32
    %c0_i32_1 = arith.constant 0 : i32
    return %arg0, %c0_i32, %c0_i32_0 : i32, i32, i32
  }
}

module attributes {stable_mosaic.version = 11 : i64} {
  func.func @_bn_apply_kernel(%arg0: i32, %arg1: i32, %arg2: memref<16x256xf32, #tpu.memory_space<vmem>>, %arg3: memref<16x1xf32, #tpu.memory_space<vmem>>, %arg4: memref<16x1xf32, #tpu.memory_space<vmem>>, %arg5: memref<16x256xf32, #tpu.memory_space<vmem>>) attributes {dimension_semantics = [#tpu.dimension_semantics<parallel>, #tpu.dimension_semantics<parallel>], iteration_bounds = array<i64: 1, 1>, scalar_prefetch = 0 : i64, scratch_operands = 0 : i64, tpu.core_type = #tpu.core_type<tc>, window_params = [{transform_indices = @transform_0, window_bounds = array<i64: 16, 256>}, {transform_indices = @transform_1, window_bounds = array<i64: 16, 1>}, {transform_indices = @transform_2, window_bounds = array<i64: 16, 1>}, {transform_indices = @transform_3, window_bounds = array<i64: 16, 256>}]} {
    %c0 = arith.constant 0 : index
    %c0_0 = arith.constant 0 : index
    %0 = vector.load %arg2[%c0, %c0_0] : memref<16x256xf32, #tpu.memory_space<vmem>>, vector<16x256xf32>
    %c0_1 = arith.constant 0 : index
    %c0_2 = arith.constant 0 : index
    %1 = vector.load %arg3[%c0_1, %c0_2] : memref<16x1xf32, #tpu.memory_space<vmem>>, vector<16x1xf32>
    %2 = vector.broadcast %1 : vector<16x1xf32> to vector<16x256xf32>
    %3 = arith.mulf %0, %2 : vector<16x256xf32>
    %c0_3 = arith.constant 0 : index
    %c0_4 = arith.constant 0 : index
    %4 = vector.load %arg4[%c0_3, %c0_4] : memref<16x1xf32, #tpu.memory_space<vmem>>, vector<16x1xf32>
    %5 = vector.broadcast %4 : vector<16x1xf32> to vector<16x256xf32>
    %6 = arith.addf %3, %5 : vector<16x256xf32>
    %c0_5 = arith.constant 0 : index
    %c0_6 = arith.constant 0 : index
    %7 = vector.load %arg5[%c0_5, %c0_6] : memref<16x256xf32, #tpu.memory_space<vmem>>, vector<16x256xf32>
    tpu.vector_store %arg5[%c0_5, %c0_6], %6 {strides = array<i32>} : memref<16x256xf32, #tpu.memory_space<vmem>>, vector<16x256xf32>,
    return
  }
  func.func @transform_0(%arg0: i32, %arg1: i32) -> (i32, i32) {
    %c0_i32 = arith.constant 0 : i32
    return %arg0, %arg1 : i32, i32
  }
  func.func @transform_1(%arg0: i32, %arg1: i32) -> (i32, i32) {
    %c0_i32 = arith.constant 0 : i32
    %c0_i32_0 = arith.constant 0 : i32
    return %arg0, %c0_i32 : i32, i32
  }
  func.func @transform_2(%arg0: i32, %arg1: i32) -> (i32, i32) {
    %c0_i32 = arith.constant 0 : i32
    %c0_i32_0 = arith.constant 0 : i32
    return %arg0, %c0_i32 : i32, i32
  }
  func.func @transform_3(%arg0: i32, %arg1: i32) -> (i32, i32) {
    %c0_i32 = arith.constant 0 : i32
    return %arg0, %arg1 : i32, i32
  }
}

</mosaic_0001>

<bundles_post_ra>
// kernel: tile.18
= control target key start
LH: loop header
LB: loop body
LE: loop exit
PB: predicated region body
PF: predicated region fallthrough
CT: control target
= control target key end

     0   :  { %s22_s0 = inlined_call_operand.vmem [shape: f32[8], index: 0, kind: input, shape index: {}]   ;;  %s23_s1 = inlined_call_operand.vmem [shape: f32[2,8], index: 1, kind: output, shape index: {}]  }
   0x1   :  { %v4_v0 = vld [vmem:[%s22_s0] ss:$0 sm:$0xff] }
   0x2   :  { %5 = vst [vmem:[%s23_s1] sm:$0x3] %v4_v0 }

// kernel: tile.0
= control target key start
LH: loop header
LB: loop body
LE: loop exit
PB: predicated region body
PF: predicated region fallthrough
CT: control target
= control target key end

     0   :  { %s66_s8 = smov 125   ;;  %s67_s9 = smov 123   ;;  %vm7_vm0 = vcmask 7168   ;;  %s117_s0 = inlined_call_operand.vmem [shape: f32[2,8], index: 0, kind: input, shape index: {}]   ;;  %s118_s1 = inlined_call_operand.vmem [shape: f32[16,1], index: 1, kind: output, shape index: {}]  }
   0x1   :  { %v4_v0 = vld [vmem:[%s117_s0] sm:$0x3]  ;;  %s65_s0 = smov 127   ;;  %s68_s10 = smov 126  }
   0x2   :  { %5 = vst [vmem:[#allocation0] sm:$0x3] %v4_v0  ;;  %s69_s11 = smov 124   ;;  %s70_s12 = smov 122  }
   0x3   :  { %s71_s13 = smov 121  }
   0x9   :  { %v9_v1 = vld [vmem:[#allocation0] sm:$0x3]  }
   0xa   :  { %v21_v2 = vld [vmem:[#allocation0] sm:$0x3]   ;;  %10 = vrot.lane.b32.xlu0 %v9_v1, %s65_s0 }
   0xb   :  { %22 = vrot.lane.b32.xlu1 %v21_v2, %s66_s8  ;;  %v33_v3 = vld [vmem:[#allocation0] sm:$0x3]  }
   0xc   :  { %34 = vrot.lane.b32.xlu2 %v33_v3, %s67_s9  ;;  %v15_v4 = vld [vmem:[#allocation0] sm:$0x3]  }
   0xd   :  { %v27_v5 = vld [vmem:[#allocation0] sm:$0x3]  }
   0xe   :  { %v39_v6 = vld [vmem:[#allocation0] sm:$0x3]  }
   0xf   :  { %v45_v7 = vld [vmem:[#allocation0] sm:$0x3]  }
  0x10   :  { %v6_v8 = vld [vmem:[#allocation0] sm:$0x3]  }
  0x11   :  { %8 = vst.msk [vmem:[%s118_s1] ss:$8 sm:$0x3] %vm7_vm0, %v6_v8  }
  0x12   :  { %16 = vrot.lane.b32.xlu0 %v15_v4, %s68_s10 }
  0x13   :  { %28 = vrot.lane.b32.xlu1 %v27_v5, %s69_s11 }
  0x14   :  { %40 = vrot.lane.b32.xlu2 %v39_v6, %s70_s12 }
  0x1a   :  { %46 = vrot.lane.b32.xlu0 %v45_v7, %s71_s13 }
  0x66   :  { %v35_v9 = vpop.permute.xlu2 %34  }
  0x67   :  { %55 = vst.msk [vmem:[%s118_s1 + $0x5] ss:$8 sm:$0x3] %vm7_vm0, %v35_v9  }
  0x6e   :  { %v41_v10 = vpop.permute.xlu2 %40  }
  0x6f   :  { %56 = vst.msk [vmem:[%s118_s1 + $0x6] ss:$8 sm:$0x3] %vm7_vm0, %v41_v10  }
  0x7c   :  { %v11_v11 = vpop.permute.xlu0 %10  }
  0x7d   :  { %v23_v12 = vpop.permute.xlu1 %22   ;;  %51 = vst.msk [vmem:[%s118_s1 + $0x1] ss:$8 sm:$0x3] %vm7_vm0, %v11_v11  }
  0x7e   :  { %53 = vst.msk [vmem:[%s118_s1 + $0x3] ss:$8 sm:$0x3] %vm7_vm0, %v23_v12  }
  0x84   :  { %v17_v13 = vpop.permute.xlu0 %16  }
  0x85   :  { %v29_v14 = vpop.permute.xlu1 %28   ;;  %52 = vst.msk [vmem:[%s118_s1 + $0x2] ss:$8 sm:$0x3] %vm7_vm0, %v17_v13  }
  0x86   :  { %54 = vst.msk [vmem:[%s118_s1 + $0x4] ss:$8 sm:$0x3] %vm7_vm0, %v29_v14  }
  0x8c   :  { %v47_v15 = vpop.permute.xlu0 %46  }
  0x8d   :  { %57 = vst.msk [vmem:[%s118_s1 + $0x7] ss:$8 sm:$0x3] %vm7_vm0, %v47_v15  }

// kernel: conv_relu_bn.3
= control target key start
LH: loop header
LB: loop body
LE: loop exit
PB: predicated region body
PF: predicated region fallthrough
CT: control target
= control target key end

     0   :  { %v61_v0 = vmov 0   ;;  %s118_s2 = inlined_call_operand.vmem [shape: f32[16,1], index: 2, kind: input, shape index: {}]   ;;  %s119_s1 = inlined_call_operand.vmem [shape: f32[16,1], index: 1, kind: input, shape index: {}]   ;;  %s120_s0 = inlined_call_operand.vmem [shape: f32[16,256], index: 0, kind: input, shape index: {}, may-alias: {0,3}]   ;;  %s121_s3 = inlined_call_operand.vmem [shape: f32[16,256], index: 3, kind: output, shape index: {}, may-alias: {0,3}]  }
   0x1   :  { %60 = vset.pattern.permute.xlu1 %v61_v0  ;;  %59 = vset.pattern.permute.xlu0 %v61_v0  ;;  %v34_v1 = vld [vmem:[%s118_s2] sm:$0xff]  ;;  %v35_v3 = vld [vmem:[%s118_s2 + $0x8] sm:$0xff] }
   0x2   :  { %v18_v2 = vld [vmem:[%s119_s1] sm:$0xff]  ;;  %38 = vperm.xlu1 %60, %v34_v1   ;;  %v19_v4 = vld [vmem:[%s119_s1 + $0x8] sm:$0xff] }
   0x3   :  { %22 = vperm.xlu0 %59, %v18_v2   ;;  %v14_v5 = vld [vmem:[%s120_s0] sm:$0xff]  ;;  %v15_v6 = vld [vmem:[%s120_s0 + $0x8] sm:$0xff] }
   0xa   :  { %43 = vperm.xlu1 %60, %v35_v3  }
   0xb   :  { %27 = vperm.xlu0 %59, %v19_v4  }
  0x74   :  { %v39_v7 = vpop.permute.xlu1 %38 }
  0x75   :  { %v23_v8 = vpop.permute.xlu0 %22 }
  0x76   :  { %v30_v9 = vmul.f32 %v23_v8, %v14_v5  ;;  %v31_v10 = vmul.f32 %v23_v8, %v15_v6 }
  0x78   :  { %v46_v11 = vadd.f32 %v39_v7, %v30_v9  ;;  %v47_v12 = vadd.f32 %v39_v7, %v31_v10 }
  0x7a   :  { %50 = vst [vmem:[%s121_s3] sm:$0xff] %v46_v11 }
  0x7b   :  { %51 = vst [vmem:[%s121_s3 + $0x8] sm:$0xff] %v47_v12 }
  0x7c   :  { %v44_v18 = vpop.permute.xlu1 %43 }
  0x7d   :  { %v28_v15 = vpop.permute.xlu0 %27 }
  0x82   :  { %v16_v13 = vld [vmem:[%s120_s0 + $0x10] sm:$0xff]  ;;  %v17_v14 = vld [vmem:[%s120_s0 + $0x18] sm:$0xff] }
  0x83   :  { %v32_v16 = vmul.f32 %v28_v15, %v16_v13  ;;  %v33_v17 = vmul.f32 %v28_v15, %v17_v14 }
  0x85   :  { %v48_v19 = vadd.f32 %v44_v18, %v32_v16  ;;  %v49_v20 = vadd.f32 %v44_v18, %v33_v17 }
  0x87   :  { %52 = vst [vmem:[%s121_s3 + $0x10] sm:$0xff] %v48_v19 }
  0x88   :  { %53 = vst [vmem:[%s121_s3 + $0x18] sm:$0xff] %v49_v20 }

// kernel: conv_relu_bn.2
= control target key start
LH: loop header
LB: loop body
LE: loop exit
PB: predicated region body
PF: predicated region fallthrough
CT: control target
= control target key end

     0   :  { %s2686_s15 = smov 0   ;;  %s3757_s0 = inlined_call_operand.vmem [shape: f32[2,16,16,4], index: 0, kind: input, shape index: {}]   ;;  %s3758_s1 = inlined_call_operand.vmem [shape: bf16[8,36], index: 1, kind: input, shape index: {}]   ;;  %s3759_s2 = inlined_call_operand.vmem [shape: f32[8,1], index: 2, kind: input, shape index: {}]   ;;  %s3760_s3 = inlined_call_operand.vmem [shape: f32[2,8,256], index: 3, kind: output, shape index: {0}]   ;;  %s3761_s4 = inlined_call_operand.vmem [shape: f32[2,8,2], index: 4, kind: output, shape index: {1}]  }
   0x1 LB: > { %s2527_s16 = sadd.s32 4294967295, %s2649_s15   ;;  %p2531_p0 = scmp.ge.s32.totalorder %s2649_s15, 1  ;;  %s2649_s15 = sphi %s2686_s15, %s15_s15  }
   0x2   : > { %p165_p1 = scmp.lt.s32.totalorder %s2649_s15, 3 }
   0x4   : > { %p166_p2 = pnand %p2531_p0, %p165_p1 }
   0x5   : > { %s2652_s17 = smov (!%p166_p2), 4   ;;  %p195_p3 = scmp.lt.s32.totalorder (!%p166_p2), %s2527_s16, 1 }
   0x6   : > { %169 = sbr.rel (%p166_p2) target bundleno = 1124 (0x464), region = 32  ;;  %s2653_s22 = smov (!%p166_p2), 8  }
   0x7   : > { %s2654_s23 = smov (!%p166_p2), 12   ;;  %s2655_s24 = smov (!%p166_p2), 16  }
   0x8   : > { %s2656_s25 = smov (!%p166_p2), 20   ;;  %s2657_s26 = smov (!%p166_p2), 24  }
   0x9   : > { %s2658_s27 = smov (!%p166_p2), 28   ;;  %s2659_s28 = smov (!%p166_p2), 32  }
   0xb   : > { %vm209_vm0 = vcmask 31744   ;;  %v2651_v0 = vmov 0.0   ;;  %s3763_s16 = smov (!%p195_p3, %s2527_s16), 1  ;;  %vm212_vm1 = vcmask 25600   ;;  %vm394_vm2 = vcmask 27648  }
   0xc   : > { %210 = vst.msk [vmem:[#allocation2] sm:$0xff] %vm209_vm0, %v2651_v0  ;;  %s2605_s18 = sshll.u32 %s3763_s16, 8  ;;  %vm619_vm3 = vcmask 60448   ;;  %vm844_vm4 = vcmask 93248   ;;  %vm1069_vm5 = vcmask 126048   ;;  %vm1294_vm6 = vcmask 158848  }
   0xd   : > { %211 = vst.msk [vmem:[#allocation2 + $0x8] sm:$0xff] %vm209_vm0, %v2651_v0  ;;  %s2767_s21 = scalar_lea.vmem %s3757_s0, %s2605_s18  ;;  %vm1519_vm7 = vcmask 191648   ;;  %vm1745_vm8 = vcmask 224448   ;;  %vm1970_vm9 = vcmask 257248   ;;  %vm2195_vm10 = vcmask 290048   ;;  %s2606_s7 = sshll.u32 %s3763_s16, 4 }
   0xe   : > { %214 = vst.msk [vmem:[#allocation2 + $0x18] sm:$0xff] %vm209_vm0, %v2651_v0  ;;  %v265_v3 = vld [vmem:[%s2767_s21] sm:$0xff]  ;;  %v266_v8 = vld [vmem:[%s2767_s21 + $0x8] sm:$0xff]  ;;  %v272_v11 = vld [vmem:[%s2767_s21 + $0x38] sm:$0xff]  ;;  %vm2347_vm11 = vcmask 293888   ;;  %s204_s10 = scalar_lea.vmem %s3760_s3, %s2606_s7  ;;  %s2536_s11 = sshll.u32 %s3763_s16, 3 }
   0xf   : > { %215 = vst.msk [vmem:[#allocation2 + $0x20] sm:$0xff] %vm209_vm0, %v2651_v0  ;;  %v269_v9 = vld [vmem:[%s2767_s21 + $0x20] sm:$0xff]  ;;  %v270_v10 = vld [vmem:[%s2767_s21 + $0x28] sm:$0xff]  ;;  %v275_v13 = vld [vmem:[%s2767_s21 + $0x50] sm:$0xff]  ;;  %s208_s14 = scalar_lea.vmem %s3761_s4, %s2536_s11  ;;  %vm2432_vm12 = vcmask 7168   ;;  %vm2439_vm13 = vcmask 15368  }
  0x10   : > { %217 = vst.msk [vmem:[#allocation2 + $0x30] sm:$0xff] %vm209_vm0, %v2651_v0  ;;  %v273_v12 = vld [vmem:[%s2767_s21 + $0x40] sm:$0xff]  ;;  %v267_v14 = vld [vmem:[%s2767_s21 + $0x10] sm:$0xff]  ;;  %v276_v15 = vld [vmem:[%s2767_s21 + $0x58] sm:$0xff] }
  0x11   : > { %218 = vst.msk [vmem:[#allocation2 + $0x38] sm:$0xff] %vm209_vm0, %v2651_v0  ;;  %v278_v16 = vld [vmem:[%s2767_s21 + $0x68] sm:$0xff]  ;;  %v268_v17 = vld [vmem:[%s2767_s21 + $0x18] sm:$0xff]  ;;  %v279_v19 = vld [vmem:[%s2767_s21 + $0x70] sm:$0xff] }
  0x12   : > { %220 = vst.msk [vmem:[#allocation2 + $0x48] sm:$0xff] %vm209_vm0, %v2651_v0  ;;  %v281_v22 = vld [vmem:[%s2767_s21 + $0x80] sm:$0xff]  ;;  %v271_v24 = vld [vmem:[%s2767_s21 + $0x30] sm:$0xff]  ;;  %v282_v25 = vld [vmem:[%s2767_s21 + $0x88] sm:$0xff] }
  0x13   : > { %221 = vst.msk [vmem:[#allocation2 + $0x50] sm:$0xff] %vm209_vm0, %v2651_v0  ;;  %v284_v27 = vld [vmem:[%s2767_s21 + $0x98] sm:$0xff]  ;;  %v274_v29 = vld [vmem:[%s2767_s21 + $0x48] sm:$0xff]  ;;  %v285_v34 = vld [vmem:[%s2767_s21 + $0xa0] sm:$0xff] }
  0x14   : > { %v427_v1 = vld [vmem:[#allocation2 + $0x1] sm:$0xff]  ;;  %223 = vst.msk [vmem:[#allocation2 + $0x60] sm:$0xff] %vm209_vm0, %v2651_v0  ;;  %v287_v36 = vld [vmem:[%s2767_s21 + $0xb0] sm:$0xff]  ;;  %v288_v43 = vld [vmem:[%s2767_s21 + $0xb8] sm:$0xff] }
  0x15   : > { %v459_v2 = vpack.c.bf16 %v427_v1, %v427_v1  ;;  %224 = vst.msk [vmem:[#allocation2 + $0x68] sm:$0xff] %vm209_vm0, %v2651_v0  ;;  %v277_v37 = vld [vmem:[%s2767_s21 + $0x60] sm:$0xff]  ;;  %v290_v45 = vld [vmem:[%s2767_s21 + $0xc8] sm:$0xff]  ;;  %v280_v46 = vld [vmem:[%s2767_s21 + $0x78] sm:$0xff] }
  0x16   : > { %226 = vst.msk [vmem:[#allocation2 + $0x78] sm:$0xff] %vm209_vm0, %v2651_v0  ;;  %v291_v52 = vld [vmem:[%s2767_s21 + $0xd0] sm:$0xff]  ;;  %v293_v54 = vld [vmem:[%s2767_s21 + $0xe0] sm:$0xff]  ;;  %v294_v61 = vld [vmem:[%s2767_s21 + $0xe8] sm:$0xff] }
  0x17   : > { %523 = vrot.lane.b32.xlu0 %v459_v2, %s2652_s17  ;;  %227 = vst.msk [vmem:[#allocation2 + $0x80] sm:$0xff] %vm209_vm0, %v2651_v0  ;;  %v283_v55 = vld [vmem:[%s2767_s21 + $0x90] sm:$0xff]  ;;  %v286_v63 = vld [vmem:[%s2767_s21 + $0xa8] sm:$0xff] }
  0x18   : > { %229 = vst.msk [vmem:[#allocation2 + $0x90] sm:$0xff] %vm209_vm0, %v2651_v0 }
  0x19   : > { %230 = vst.msk [vmem:[#allocation2 + $0x98] sm:$0xff] %vm209_vm0, %v2651_v0 }
  0x1a   : > { %232 = vst.msk [vmem:[#allocation2 + $0xa8] sm:$0xff] %vm209_vm0, %v2651_v0 }
  0x1b   : > { %233 = vst.msk [vmem:[#allocation2 + $0xb0] sm:$0xff] %vm209_vm0, %v2651_v0 }
  0x1c   : > { %235 = vst.msk [vmem:[#allocation2 + $0xc0] sm:$0xff] %vm209_vm0, %v2651_v0 }
  0x1d   : > { %236 = vst.msk [vmem:[#allocation2 + $0xc8] sm:$0xff] %vm209_vm0, %v2651_v0 }
  0x1e   : > { %238 = vst.msk [vmem:[#allocation2 + $0xd8] sm:$0xff] %vm209_vm0, %v2651_v0 }
  0x1f   : > { %239 = vst.msk [vmem:[#allocation2 + $0xe0] sm:$0xff] %vm209_vm0, %v2651_v0 }
  0x20   : > { %241 = vst.msk [vmem:[#allocation2 + $0xf0] sm:$0xff] %vm209_vm0, %v2651_v0 }
  0x21   : > { %242 = vst.msk [vmem:[#allocation2 + $0xf8] sm:$0xff] %vm209_vm0, %v2651_v0 }
  0x22   : > { %244 = vst.msk [vmem:[#allocation2 + $0x108] sm:$0xff] %vm209_vm0, %v2651_v0 }
  0x23   : > { %245 = vst.msk [vmem:[#allocation2 + $0x110] sm:$0xff] %vm209_vm0, %v2651_v0 }
  0x24   : > { %247 = vst.msk [vmem:[#allocation2 + $0x120] sm:$0xff] %vm209_vm0, %v2651_v0 }
  0x25   : > { %248 = vst.msk [vmem:[#allocation2 + $0x128] sm:$0xff] %vm209_vm0, %v2651_v0 }
  0x26   : > { %250 = vst.msk [vmem:[#allocation2 + $0x138] sm:$0xff] %vm209_vm0, %v2651_v0 }
  0x27   : > { %251 = vst.msk [vmem:[#allocation2 + $0x140] sm:$0xff] %vm209_vm0, %v2651_v0 }
  0x28   : > { %253 = vst.msk [vmem:[#allocation2 + $0x150] sm:$0xff] %vm209_vm0, %v2651_v0 }
  0x29   : > { %254 = vst.msk [vmem:[#allocation2 + $0x158] sm:$0xff] %vm209_vm0, %v2651_v0 }
  0x2a   : > { %256 = vst.msk [vmem:[#allocation2 + $0x168] sm:$0xff] %vm209_vm0, %v2651_v0 }
  0x2b   : > { %257 = vst.msk [vmem:[#allocation2 + $0x170] sm:$0xff] %vm209_vm0, %v2651_v0 }
  0x2c   : > { %259 = vst.msk [vmem:[#allocation2 + $0x180] sm:$0xff] %vm209_vm0, %v2651_v0 }
  0x2d   : > { %260 = vst.msk [vmem:[#allocation2 + $0x188] sm:$0xff] %vm209_vm0, %v2651_v0 }
  0x2e   : > { %262 = vst.msk [vmem:[#allocation2 + $0x198] sm:$0xff] %vm209_vm0, %v2651_v0 }
  0x2f   : > { %263 = vst.msk [vmem:[#allocation2 + $0x1a0] sm:$0xff] %vm209_vm0, %v2651_v0 }
  0x30   : > { %298 = vst.msk [vmem:[#allocation2 + $0x19] sm:$0xff] %vm209_vm0, %v265_v3 }
  0x31   : > { %213 = vst.msk [vmem:[#allocation2 + $0x10] sm:$0x3] %vm212_vm1, %v2651_v0 }
  0x32   : > { %216 = vst.msk [vmem:[#allocation2 + $0x28] sm:$0x3] %vm212_vm1, %v2651_v0 }
  0x33   : > { %219 = vst.msk [vmem:[#allocation2 + $0x40] sm:$0x3] %vm212_vm1, %v2651_v0 }
  0x34   : > { %222 = vst.msk [vmem:[#allocation2 + $0x58] sm:$0x3] %vm212_vm1, %v2651_v0 }
  0x35   : > { %225 = vst.msk [vmem:[#allocation2 + $0x70] sm:$0x3] %vm212_vm1, %v2651_v0 }
  0x36   : > { %228 = vst.msk [vmem:[#allocation2 + $0x88] sm:$0x3] %vm212_vm1, %v2651_v0 }
  0x37   : > { %v429_v4 = vld [vmem:[#allocation2 + $0x19] sm:$0xff]  ;;  %231 = vst.msk [vmem:[#allocation2 + $0xa0] sm:$0x3] %vm212_vm1, %v2651_v0 }
  0x38   : > { %v461_v5 = vpack.c.bf16 %v429_v4, %v429_v4  ;;  %v428_v6 = vld [vmem:[#allocation2 + $0x9] sm:$0xff]  ;;  %234 = vst.msk [vmem:[#allocation2 + $0xb8] sm:$0x3] %vm212_vm1, %v2651_v0 }
  0x39   : > { %v460_v7 = vpack.c.bf16 %v428_v6, %v428_v6  ;;  %237 = vst.msk [vmem:[#allocation2 + $0xd0] sm:$0x3] %vm212_vm1, %v2651_v0  ;;  %v289_v6 = vld [vmem:[%s2767_s21 + $0xc0] sm:$0xff] }
  0x3a   : > { %527 = vrot.lane.b32.xlu1 %v461_v5, %s2652_s17  ;;  %240 = vst.msk [vmem:[#allocation2 + $0xe8] sm:$0x3] %vm212_vm1, %v2651_v0 }
  0x3b   : > { %525 = vrot.lane.b32.xlu0 %v460_v7, %s2652_s17  ;;  %243 = vst.msk [vmem:[#allocation2 + $0x100] sm:$0x3] %vm212_vm1, %v2651_v0 }
  0x3c   : > { %246 = vst.msk [vmem:[#allocation2 + $0x118] sm:$0x3] %vm212_vm1, %v2651_v0 }
  0x3d   : > { %249 = vst.msk [vmem:[#allocation2 + $0x130] sm:$0x3] %vm212_vm1, %v2651_v0 }
  0x3e   : > { %252 = vst.msk [vmem:[#allocation2 + $0x148] sm:$0x3] %vm212_vm1, %v2651_v0 }
  0x3f   : > { %255 = vst.msk [vmem:[#allocation2 + $0x160] sm:$0x3] %vm212_vm1, %v2651_v0 }
  0x40   : > { %258 = vst.msk [vmem:[#allocation2 + $0x178] sm:$0x3] %vm212_vm1, %v2651_v0 }
  0x41   : > { %261 = vst.msk [vmem:[#allocation2 + $0x190] sm:$0x3] %vm212_vm1, %v2651_v0 }
  0x42   : > { %264 = vst.msk [vmem:[#allocation2 + $0x1a8] sm:$0x3] %vm212_vm1, %v2651_v0 }
  0x43   : > { %299 = vst.msk [vmem:[#allocation2 + $0x21] sm:$0xff] %vm209_vm0, %v266_v8 }
  0x44   : > { %302 = vst.msk [vmem:[#allocation2 + $0x49] sm:$0xff] %vm209_vm0, %v269_v9 }
  0x45   : > { %303 = vst.msk [vmem:[#allocation2 + $0x51] sm:$0xff] %vm209_vm0, %v270_v10 }
  0x46   : > { %305 = vst.msk [vmem:[#allocation2 + $0x69] sm:$0xff] %vm209_vm0, %v272_v11 }
  0x47   : > { %306 = vst.msk [vmem:[#allocation2 + $0x79] sm:$0xff] %vm209_vm0, %v273_v12 }
  0x48   : > { %308 = vst.msk [vmem:[#allocation2 + $0x91] sm:$0xff] %vm209_vm0, %v275_v13  ;;  %v292_v13 = vld [vmem:[%s2767_s21 + $0xd8] sm:$0xff] }
  0x49   : > { %300 = vst.msk [vmem:[#allocation2 + $0x31] sm:$0xff] %vm209_vm0, %v267_v14 }
  0x4a   : > { %v430_v18 = vld [vmem:[#allocation2 + $0x21] sm:$0xff]  ;;  %309 = vst.msk [vmem:[#allocation2 + $0x99] sm:$0xff] %vm209_vm0, %v276_v15 }
  0x4b   : > { %v462_v20 = vpack.c.bf16 %v430_v18, %v430_v18  ;;  %v433_v21 = vld [vmem:[#allocation2 + $0x49] sm:$0xff]  ;;  %311 = vst.msk [vmem:[#allocation2 + $0xb1] sm:$0xff] %vm209_vm0, %v278_v16 }
  0x4c   : > { %v465_v23 = vpack.c.bf16 %v433_v21, %v433_v21  ;;  %301 = vst.msk [vmem:[#allocation2 + $0x39] sm:$0xff] %vm209_vm0, %v268_v17  ;;  %v434_v26 = vld [vmem:[#allocation2 + $0x51] sm:$0xff] }
  0x4d   : > { %529 = vrot.lane.b32.xlu1 %v462_v20, %s2652_s17  ;;  %312 = vst.msk [vmem:[#allocation2 + $0xc1] sm:$0xff] %vm209_vm0, %v279_v19  ;;  %v436_v28 = vld [vmem:[#allocation2 + $0x69] sm:$0xff]  ;;  %v466_v31 = vpack.c.bf16 %v434_v26, %v434_v26 }
  0x4e   : > { %535 = vrot.lane.b32.xlu0 %v465_v23, %s2652_s17  ;;  %314 = vst.msk [vmem:[#allocation2 + $0xd9] sm:$0xff] %vm209_vm0, %v281_v22  ;;  %v468_v33 = vpack.c.bf16 %v436_v28, %v436_v28  ;;  %v437_v38 = vld [vmem:[#allocation2 + $0x79] sm:$0xff]  ;;  %v653_v28 = vld [vmem:[#allocation2 + $0xa] sm:$0xff] }
  0x4f   : > { %304 = vst.msk [vmem:[#allocation2 + $0x61] sm:$0xff] %vm209_vm0, %v271_v24  ;;  %v439_v39 = vld [vmem:[#allocation2 + $0x91] sm:$0xff]  ;;  %v469_v41 = vpack.c.bf16 %v437_v38, %v437_v38 }
  0x50   : > { %v431_v30 = vld [vmem:[#allocation2 + $0x31] sm:$0xff]  ;;  %315 = vst.msk [vmem:[#allocation2 + $0xe1] sm:$0xff] %vm209_vm0, %v282_v25  ;;  %v471_v42 = vpack.c.bf16 %v439_v39, %v439_v39 }
  0x51   : > { %v463_v32 = vpack.c.bf16 %v431_v30, %v431_v30  ;;  %317 = vst.msk [vmem:[#allocation2 + $0xf9] sm:$0xff] %vm209_vm0, %v284_v27  ;;  %v440_v47 = vld [vmem:[#allocation2 + $0x99] sm:$0xff]  ;;  %v334_v38 = vld [vmem:[#allocation2 + $0x30] sm:$0xff] }
  0x52   : > { %307 = vst.msk [vmem:[#allocation2 + $0x81] sm:$0xff] %vm209_vm0, %v274_v29  ;;  %v442_v48 = vld [vmem:[#allocation2 + $0xb1] sm:$0xff]  ;;  %v472_v50 = vpack.c.bf16 %v440_v47, %v440_v47  ;;  %v330_v27 = vld [vmem:[#allocation2] sm:$0xff] }
  0x53   : > { %531 = vrot.lane.b32.xlu2 %v463_v32, %s2652_s17  ;;  %318 = vst.msk [vmem:[#allocation2 + $0x109] sm:$0xff] %vm209_vm0, %v285_v34  ;;  %v432_v35 = vld [vmem:[#allocation2 + $0x39] sm:$0xff]  ;;  %v474_v51 = vpack.c.bf16 %v442_v48, %v442_v48  ;;  %v652_v47 = vld [vmem:[#allocation2 + $0x2] sm:$0xff] }
  0x54   : > { %320 = vst.msk [vmem:[#allocation2 + $0x121] sm:$0xff] %vm209_vm0, %v287_v36  ;;  %v2862_v40 = vpack.c.bf16 %v432_v35, %v432_v35  ;;  %v443_v56 = vld [vmem:[#allocation2 + $0xc1] sm:$0xff]  ;;  %v332_v36 = vld [vmem:[#allocation2 + $0x18] sm:$0xff] }
  0x55   : > { %537 = vrot.lane.b32.xlu1 %v466_v31, %s2652_s17  ;;  %310 = vst.msk [vmem:[#allocation2 + $0xa9] sm:$0xff] %vm209_vm0, %v277_v37  ;;  %v445_v57 = vld [vmem:[#allocation2 + $0xd9] sm:$0xff]  ;;  %v475_v59 = vpack.c.bf16 %v443_v56, %v443_v56  ;;  %v362_v31 = vpack.c.bf16 %v330_v27, %v330_v27  ;;  %v331_v37 = vld [vmem:[#allocation2 + $0x8] sm:$0xff] }
  0x56   : > { %541 = vrot.lane.b32.xlu0 %v468_v33, %s2652_s17  ;;  %321 = vst.msk [vmem:[#allocation2 + $0x129] sm:$0xff] %vm209_vm0, %v288_v43  ;;  %v435_v44 = vld [vmem:[#allocation2 + $0x61] sm:$0xff]  ;;  %v477_v60 = vpack.c.bf16 %v445_v57, %v445_v57  ;;  %v685_v33 = vpack.c.bf16 %v653_v28, %v653_v28  ;;  %v656_v39 = vld [vmem:[#allocation2 + $0x32] sm:$0xff]  ;;  %v363_v43 = vpack.c.bf16 %v331_v37, %v331_v37  ;;  %v661_v28 = vld [vmem:[#allocation2 + $0x6a] sm:$0xff] }
  0x57   : > { %323 = vst.msk [vmem:[#allocation2 + $0x141] sm:$0xff] %vm209_vm0, %v290_v45  ;;  %v2874_v49 = vpack.c.bf16 %v435_v44, %v435_v44  ;;  %v446_v0 = vld [vmem:[#allocation2 + $0xe1] sm:$0xff]  ;;  %v2934_v44 = vpack.c.bf16 %v334_v38, %v334_v38 }
  0x58   : > { %313 = vst.msk [vmem:[#allocation2 + $0xc9] sm:$0xff] %vm209_vm0, %v280_v46  ;;  %v448_v1 = vld [vmem:[#allocation2 + $0xf9] sm:$0xff]  ;;  %v478_v3 = vpack.c.bf16 %v446_v0, %v446_v0  ;;  %v688_v46 = vpack.c.bf16 %v656_v39, %v656_v39  ;;  %v339_v0 = vld [vmem:[#allocation2 + $0x68] sm:$0xff] }
  0x59   : > { %324 = vst.msk [vmem:[#allocation2 + $0x151] sm:$0xff] %vm209_vm0, %v291_v52  ;;  %v438_v53 = vld [vmem:[#allocation2 + $0x81] sm:$0xff]  ;;  %v480_v4 = vpack.c.bf16 %v448_v1, %v448_v1  ;;  %v335_v52 = vld [vmem:[#allocation2 + $0x38] sm:$0xff] }
  0x5a   : > { %326 = vst.msk [vmem:[#allocation2 + $0x169] sm:$0xff] %vm209_vm0, %v293_v54  ;;  %v2886_v58 = vpack.c.bf16 %v438_v53, %v438_v53  ;;  %v449_v7 = vld [vmem:[#allocation2 + $0x109] sm:$0xff]  ;;  %v654_v35 = vld [vmem:[#allocation2 + $0x1a] sm:$0xff]  ;;  %v659_v53 = vld [vmem:[#allocation2 + $0x52] sm:$0xff]  ;;  %v684_v54 = vpack.c.bf16 %v652_v47, %v652_v47  ;;  %v2948_v57 = vpack.c.bf16 %v335_v52, %v335_v52 }
  0x5b   : > { %533 = vrot.lane.b32.xlu2 %v2862_v40, %s2652_s17  ;;  %316 = vst.msk [vmem:[#allocation2 + $0xf1] sm:$0xff] %vm209_vm0, %v283_v55  ;;  %v451_v8 = vld [vmem:[#allocation2 + $0x121] sm:$0xff]  ;;  %v481_v10 = vpack.c.bf16 %v449_v7, %v449_v7  ;;  %v686_v45 = vpack.c.bf16 %v654_v35, %v654_v35 }
  0x5c   : > { %327 = vst.msk [vmem:[#allocation2 + $0x171] sm:$0xff] %vm209_vm0, %v294_v61  ;;  %v441_v62 = vld [vmem:[#allocation2 + $0xa9] sm:$0xff]  ;;  %v483_v11 = vpack.c.bf16 %v451_v8, %v451_v8  ;;  %v657_v48 = vld [vmem:[#allocation2 + $0x3a] sm:$0xff] }
  0x5d   : > { %543 = vrot.lane.b32.xlu1 %v469_v41, %s2652_s17  ;;  %319 = vst.msk [vmem:[#allocation2 + $0x111] sm:$0xff] %vm209_vm0, %v286_v63  ;;  %v2896_v2 = vpack.c.bf16 %v441_v62, %v441_v62  ;;  %v452_v14 = vld [vmem:[#allocation2 + $0x129] sm:$0xff]  ;;  %v338_v1 = vld [vmem:[#allocation2 + $0x60] sm:$0xff] }
  0x5e   : > { %547 = vrot.lane.b32.xlu0 %v471_v42, %s2652_s17  ;;  %322 = vst.msk [vmem:[#allocation2 + $0x139] sm:$0xff] %vm209_vm0, %v289_v6  ;;  %v454_v15 = vld [vmem:[#allocation2 + $0x141] sm:$0xff]  ;;  %v484_v17 = vpack.c.bf16 %v452_v14, %v452_v14  ;;  %v2932_v42 = vpack.c.bf16 %v332_v36, %v332_v36  ;;  %v337_v63 = vld [vmem:[#allocation2 + $0x50] sm:$0xff]  ;;  %v2961_v6 = vpack.c.bf16 %v339_v0, %v339_v0 }
  0x5f   : > { %v444_v5 = vld [vmem:[#allocation2 + $0xc9] sm:$0xff]  ;;  %325 = vst.msk [vmem:[#allocation2 + $0x159] sm:$0xff] %vm209_vm0, %v292_v13  ;;  %v486_v18 = vpack.c.bf16 %v454_v15, %v454_v15  ;;  %v2963_v7 = vpack.c.bf16 %v338_v1, %v338_v1  ;;  %v2996_v36 = vpack.c.bf16 %v661_v28, %v661_v28  ;;  %v667_v1 = vld [vmem:[#allocation2 + $0xb2] sm:$0xff] }
  0x60   : > { %v2904_v9 = vpack.c.bf16 %v444_v5, %v444_v5  ;;  %v455_v20 = vld [vmem:[#allocation2 + $0x151] sm:$0xff]  ;;  %395 = vst.msk [vmem:[#allocation3] sm:$0xf] %vm394_vm2, %v362_v31  ;;  %v655_v61 = vld [vmem:[#allocation2 + $0x22] sm:$0xff]  ;;  %v2959_v5 = vpack.c.bf16 %v337_v63, %v337_v63 }
  0x61   : > { %v457_v21 = vld [vmem:[#allocation2 + $0x169] sm:$0xff]  ;;  %v487_v23 = vpack.c.bf16 %v455_v20, %v455_v20  ;;  %397 = vst.msk [vmem:[#allocation3 + $0x8] sm:$0xf] %vm394_vm2, %v2932_v42  ;;  %v665_v20 = vld [vmem:[#allocation2 + $0x9a] sm:$0xff] }
  0x62   : > { %v447_v12 = vld [vmem:[#allocation2 + $0xf1] sm:$0xff]  ;;  %v489_v24 = vpack.c.bf16 %v457_v21, %v457_v21  ;;  %396 = vst.msk [vmem:[#allocation3 + $0x4] sm:$0xf] %vm394_vm2, %v363_v43  ;;  %v660_v62 = vld [vmem:[#allocation2 + $0x62] sm:$0xff]  ;;  %v697_v27 = vpack.c.bf16 %v665_v20, %v665_v20 }
  0x63   : > { %539 = vrot.lane.b32.xlu2 %v2874_v49, %s2652_s17  ;;  %v2912_v16 = vpack.c.bf16 %v447_v12, %v447_v12  ;;  %v458_v26 = vld [vmem:[#allocation2 + $0x171] sm:$0xff]  ;;  %399 = vst.msk [vmem:[#allocation3 + $0x10] sm:$0xf] %vm394_vm2, %v2934_v44  ;;  %v692_v8 = vpack.c.bf16 %v660_v62, %v660_v62  ;;  %v663_v13 = vld [vmem:[#allocation2 + $0x82] sm:$0xff] }
  0x64   : > { %v450_v19 = vld [vmem:[#allocation2 + $0x111] sm:$0xff]  ;;  %v490_v32 = vpack.c.bf16 %v458_v26, %v458_v26  ;;  %400 = vst.msk [vmem:[#allocation3 + $0x14] sm:$0xf] %vm394_vm2, %v2948_v57  ;;  %v695_v26 = vpack.c.bf16 %v663_v13, %v663_v13  ;;  %v668_v35 = vld [vmem:[#allocation2 + $0xc2] sm:$0xff] }
  0x65   : > { %549 = vrot.lane.b32.xlu1 %v472_v50, %s2652_s17  ;;  %v2918_v22 = vpack.c.bf16 %v450_v19, %v450_v19  ;;  %v453_v25 = vld [vmem:[#allocation2 + $0x139] sm:$0xff]  ;;  %402 = vst.msk [vmem:[#allocation3 + $0x1c] sm:$0xf] %vm394_vm2, %v2959_v5  ;;  %v658_v12 = vld [vmem:[#allocation2 + $0x4a] sm:$0xff]  ;;  %v700_v43 = vpack.c.bf16 %v668_v35, %v668_v35 }
  0x66   : > { %553 = vrot.lane.b32.xlu0 %v474_v51, %s2652_s17  ;;  %v2924_v29 = vpack.c.bf16 %v453_v25, %v453_v25  ;;  %v456_v34 = vld [vmem:[#allocation2 + $0x159] sm:$0xff]  ;;  %v336_v51 = vld [vmem:[#allocation2 + $0x48] sm:$0xff]  ;;  %404 = vst.msk [vmem:[#allocation3 + $0x24] sm:$0xf] %vm394_vm2, %v2961_v6  ;;  %v2977_v21 = vpack.c.bf16 %v658_v12, %v658_v12 }
  0x67   : > { %v488_v41 = vpack.c.bf16 %v456_v34, %v456_v34  ;;  %v333_v50 = vld [vmem:[#allocation2 + $0x20] sm:$0xff]  ;;  %v2946_v56 = vpack.c.bf16 %v336_v51, %v336_v51  ;;  %403 = vst.msk [vmem:[#allocation3 + $0x20] sm:$0xf] %vm394_vm2, %v2963_v7  ;;  %v344_v34 = vld [vmem:[#allocation2 + $0xa8] sm:$0xff]  ;;  %v675_v28 = vld [vmem:[#allocation2 + $0x112] sm:$0xff] }
  0x68   : > { %v2944_v55 = vpack.c.bf16 %v333_v50, %v333_v50  ;;  %v341_v19 = vld [vmem:[#allocation2 + $0x80] sm:$0xff]  ;;  %v3002_v39 = vpack.c.bf16 %v344_v34, %v344_v34  ;;  %v348_v50 = vld [vmem:[#allocation2 + $0xd8] sm:$0xff]  ;;  %v347_v51 = vld [vmem:[#allocation2 + $0xc8] sm:$0xff] }
  0x69   : > { %401 = vst.msk [vmem:[#allocation3 + $0x18] sm:$0xf] %vm394_vm2, %v2946_v56  ;;  %v2983_v25 = vpack.c.bf16 %v341_v19, %v341_v19  ;;  %v3022_v62 = vpack.c.bf16 %v347_v51, %v347_v51  ;;  %v674_v13 = vld [vmem:[#allocation2 + $0x10a] sm:$0xff]  ;;  %v673_v51 = vld [vmem:[#allocation2 + $0xfa] sm:$0xff] }
  0x6a   : > { %398 = vst.msk [vmem:[#allocation3 + $0xc] sm:$0xf] %vm394_vm2, %v2944_v55  ;;  %v677_v35 = vld [vmem:[#allocation2 + $0x12a] sm:$0xff] }
  0x6b   : > { %545 = vrot.lane.b32.xlu2 %v2886_v58, %s2652_s17  ;;  %406 = vst.msk [vmem:[#allocation3 + $0x2c] sm:$0xf] %vm394_vm2, %v2983_v25 }
  0x6c   : > { %409 = vst.msk [vmem:[#allocation3 + $0x38] sm:$0xf] %vm394_vm2, %v3002_v39 }
  0x6d   : > { %555 = vrot.lane.b32.xlu1 %v475_v59, %s2652_s17  ;;  %v689_v59 = vpack.c.bf16 %v657_v48, %v657_v48  ;;  %v346_v48 = vld [vmem:[#allocation2 + $0xc0] sm:$0xff]  ;;  %412 = vst.msk [vmem:[#allocation3 + $0x44] sm:$0xf] %vm394_vm2, %v3022_v62 }
  0x6e   : > { %559 = vrot.lane.b32.xlu0 %v477_v60, %s2652_s17  ;;  %v691_v60 = vpack.c.bf16 %v659_v53, %v659_v53  ;;  %v671_v53 = vld [vmem:[#allocation2 + $0xe2] sm:$0xff] }
  0x6f   : > { %v703_v0 = vpack.c.bf16 %v671_v53, %v671_v53 }
  0x73   : > { %551 = vrot.lane.b32.xlu2 %v2896_v2, %s2652_s17 }
  0x75   : > { %561 = vrot.lane.b32.xlu1 %v478_v3, %s2652_s17  ;;  %v662_v3 = vld [vmem:[#allocation2 + $0x7a] sm:$0xff] }
  0x76   : > { %565 = vrot.lane.b32.xlu0 %v480_v4, %s2652_s17  ;;  %v687_v4 = vpack.c.bf16 %v655_v61, %v655_v61 }
  0x7b   : > { %557 = vrot.lane.b32.xlu2 %v2904_v9, %s2652_s17 }
  0x7d   : > { %567 = vrot.lane.b32.xlu1 %v481_v10, %s2652_s17  ;;  %v694_v10 = vpack.c.bf16 %v662_v3, %v662_v3  ;;  %v672_v3 = vld [vmem:[#allocation2 + $0xf2] sm:$0xff] }
  0x7e   : > { %571 = vrot.lane.b32.xlu0 %v483_v11, %s2652_s17  ;;  %v704_v20 = vpack.c.bf16 %v672_v3, %v672_v3  ;;  %v680_v3 = vld [vmem:[#allocation2 + $0x152] sm:$0xff] }
  0x83   : > { %563 = vrot.lane.b32.xlu2 %v2912_v16, %s2652_s17 }
  0x85   : > { %573 = vrot.lane.b32.xlu1 %v484_v17, %s2652_s17  ;;  %v340_v17 = vld [vmem:[#allocation2 + $0x78] sm:$0xff] }
  0x86   : > { %577 = vrot.lane.b32.xlu0 %v486_v18, %s2652_s17  ;;  %v342_v18 = vld [vmem:[#allocation2 + $0x90] sm:$0xff] }
  0x89   : > { %v524_v30 = vpop.permute.xlu0 %523 }
  0x8a   : > { %620 = vst.msk [vmem:[#allocation3] sm:$0xf] %vm619_vm3, %v524_v30  ;;  %v666_v30 = vld [vmem:[#allocation2 + $0xaa] sm:$0xff] }
  0x8b   : > { %569 = vrot.lane.b32.xlu2 %v2918_v22, %s2652_s17 }
  0x8d   : > { %579 = vrot.lane.b32.xlu1 %v487_v23, %s2652_s17  ;;  %v2979_v23 = vpack.c.bf16 %v340_v17, %v340_v17 }
  0x8e   : > { %583 = vrot.lane.b32.xlu0 %v489_v24, %s2652_s17  ;;  %v2981_v24 = vpack.c.bf16 %v342_v18, %v342_v18 }
  0x8f   : > { %405 = vst.msk [vmem:[#allocation3 + $0x28] sm:$0xf] %vm394_vm2, %v2979_v23 }
  0x90   : > { %407 = vst.msk [vmem:[#allocation3 + $0x30] sm:$0xf] %vm394_vm2, %v2981_v24 }
  0x93   : > { %575 = vrot.lane.b32.xlu2 %v2924_v29, %s2652_s17 }
  0x95   : > { %585 = vrot.lane.b32.xlu1 %v490_v32, %s2652_s17  ;;  %v343_v32 = vld [vmem:[#allocation2 + $0x98] sm:$0xff] }
  0x96   : > { %750 = vrot.lane.b32.xlu0 %v685_v33, %s2653_s22  ;;  %v345_v33 = vld [vmem:[#allocation2 + $0xb0] sm:$0xff]  ;;  %v2998_v37 = vpack.c.bf16 %v343_v32, %v343_v32  ;;  %v354_v32 = vld [vmem:[#allocation2 + $0x120] sm:$0xff] }
  0x97   : > { %v3000_v38 = vpack.c.bf16 %v345_v33, %v345_v33  ;;  %v353_v33 = vld [vmem:[#allocation2 + $0x110] sm:$0xff] }
  0x98   : > { %408 = vst.msk [vmem:[#allocation3 + $0x34] sm:$0xf] %vm394_vm2, %v2998_v37 }
  0x99   : > { %410 = vst.msk [vmem:[#allocation3 + $0x3c] sm:$0xf] %vm394_vm2, %v3000_v38 }
  0x9b   : > { %581 = vrot.lane.b32.xlu2 %v488_v41, %s2652_s17  ;;  %v698_v41 = vpack.c.bf16 %v666_v30, %v666_v30 }
  0x9d   : > { %752 = vrot.lane.b32.xlu1 %v686_v45, %s2653_s22  ;;  %v664_v45 = vld [vmem:[#allocation2 + $0x92] sm:$0xff] }
  0x9e   : > { %756 = vrot.lane.b32.xlu0 %v688_v46, %s2653_s22  ;;  %v669_v46 = vld [vmem:[#allocation2 + $0xca] sm:$0xff] }
  0x9f   : > { %v701_v63 = vpack.c.bf16 %v669_v46, %v669_v46 }
  0xa3   : > { %748 = vrot.lane.b32.xlu2 %v684_v54, %s2653_s22  ;;  %v3015_v54 = vpack.c.bf16 %v664_v45, %v664_v45  ;;  %v3061_v45 = vpack.c.bf16 %v354_v32, %v354_v32 }
  0xa5   : > { %758 = vrot.lane.b32.xlu1 %v689_v59, %s2653_s22  ;;  %v3017_v59 = vpack.c.bf16 %v346_v48, %v346_v48  ;;  %v707_v48 = vpack.c.bf16 %v675_v28, %v675_v28  ;;  %419 = vst.msk [vmem:[#allocation3 + $0x60] sm:$0xf] %vm394_vm2, %v3061_v45  ;;  %v358_v28 = vld [vmem:[#allocation2 + $0x150] sm:$0xff] }
  0xa6   : > { %762 = vrot.lane.b32.xlu0 %v691_v60, %s2653_s22  ;;  %v3019_v60 = vpack.c.bf16 %v348_v50, %v348_v50  ;;  %v709_v50 = vpack.c.bf16 %v677_v35, %v677_v35  ;;  %v3101_v35 = vpack.c.bf16 %v358_v28, %v358_v28 }
  0xa7   : > { %411 = vst.msk [vmem:[#allocation3 + $0x40] sm:$0xf] %vm394_vm2, %v3017_v59 }
  0xa8   : > { %413 = vst.msk [vmem:[#allocation3 + $0x48] sm:$0xf] %vm394_vm2, %v3019_v60 }
  0xa9   : > { %423 = vst.msk [vmem:[#allocation3 + $0x70] sm:$0xf] %vm394_vm2, %v3101_v35 }
  0xab   : > { %754 = vrot.lane.b32.xlu2 %v687_v4, %s2653_s22 }
  0xac   : > { %v528_v11 = vpop.permute.xlu1 %527 }
  0xad   : > { %764 = vrot.lane.b32.xlu1 %v692_v8, %s2653_s22  ;;  %622 = vst.msk [vmem:[#allocation3 + $0x8] sm:$0xf] %vm619_vm3, %v528_v11  ;;  %v526_v14 = vpop.permute.xlu0 %525  ;;  %v532_v15 = vpop.permute.xlu2 %531  ;;  %v349_v8 = vld [vmem:[#allocation2 + $0xe0] sm:$0xff]  ;;  %v350_v11 = vld [vmem:[#allocation2 + $0xf0] sm:$0xff] }
  0xae   : > { %768 = vrot.lane.b32.xlu0 %v694_v10, %s2653_s22  ;;  %621 = vst.msk [vmem:[#allocation3 + $0x4] sm:$0xf] %vm619_vm3, %v526_v14  ;;  %v351_v10 = vld [vmem:[#allocation2 + $0xf8] sm:$0xff]  ;;  %v3036_v14 = vpack.c.bf16 %v667_v1, %v667_v1  ;;  %v3043_v19 = vpack.c.bf16 %v350_v11, %v350_v11 }
  0xaf   : > { %624 = vst.msk [vmem:[#allocation3 + $0x10] sm:$0xf] %vm619_vm3, %v532_v15  ;;  %v3038_v15 = vpack.c.bf16 %v349_v8, %v349_v8  ;;  %v3040_v17 = vpack.c.bf16 %v351_v10, %v351_v10 }
  0xb0   : > { %415 = vst.msk [vmem:[#allocation3 + $0x50] sm:$0xf] %vm394_vm2, %v3043_v19 }
  0xb1   : > { %414 = vst.msk [vmem:[#allocation3 + $0x4c] sm:$0xf] %vm394_vm2, %v3038_v15 }
  0xb2   : > { %416 = vst.msk [vmem:[#allocation3 + $0x54] sm:$0xf] %vm394_vm2, %v3040_v17 }
  0xb3   : > { %760 = vrot.lane.b32.xlu2 %v2977_v21, %s2653_s22 }
  0xb5   : > { %770 = vrot.lane.b32.xlu1 %v695_v26, %s2653_s22  ;;  %v534_v31 = vpop.permute.xlu2 %533  ;;  %v706_v26 = vpack.c.bf16 %v674_v13, %v674_v13 }
  0xb6   : > { %774 = vrot.lane.b32.xlu0 %v697_v27, %s2653_s22  ;;  %625 = vst.msk [vmem:[#allocation3 + $0x14] sm:$0xf] %vm619_vm3, %v534_v31  ;;  %v670_v27 = vld [vmem:[#allocation2 + $0xda] sm:$0xff]  ;;  %v352_v31 = vld [vmem:[#allocation2 + $0x108] sm:$0xff] }
  0xbb   : > { %766 = vrot.lane.b32.xlu2 %v2996_v36, %s2653_s22 }
  0xbd   : > { %776 = vrot.lane.b32.xlu1 %v698_v41, %s2653_s22  ;;  %v540_v47 = vpop.permute.xlu2 %539  ;;  %v3057_v41 = vpack.c.bf16 %v670_v27, %v670_v27 }
  0xbe   : > { %780 = vrot.lane.b32.xlu0 %v700_v43, %s2653_s22  ;;  %628 = vst.msk [vmem:[#allocation3 + $0x20] sm:$0xf] %vm619_vm3, %v540_v47  ;;  %v3059_v43 = vpack.c.bf16 %v352_v31, %v352_v31  ;;  %v3064_v47 = vpack.c.bf16 %v353_v33, %v353_v33  ;;  %v359_v31 = vld [vmem:[#allocation2 + $0x158] sm:$0xff] }
  0xbf   : > { %v530_v52 = vpop.permute.xlu1 %529  ;;  %v683_v33 = vld [vmem:[#allocation2 + $0x172] sm:$0xff] }
  0xc0   : > { %623 = vst.msk [vmem:[#allocation3 + $0xc] sm:$0xf] %vm619_vm3, %v530_v52  ;;  %v536_v61 = vpop.permute.xlu0 %535  ;;  %v678_v52 = vld [vmem:[#allocation2 + $0x13a] sm:$0xff] }
  0xc1   : > { %626 = vst.msk [vmem:[#allocation3 + $0x18] sm:$0xf] %vm619_vm3, %v536_v61  ;;  %v355_v61 = vld [vmem:[#allocation2 + $0x128] sm:$0xff]  ;;  %v710_v13 = vpack.c.bf16 %v678_v52, %v678_v52  ;;  %v715_v52 = vpack.c.bf16 %v683_v33, %v683_v33 }
  0xc2   : > { %417 = vst.msk [vmem:[#allocation3 + $0x58] sm:$0xf] %vm394_vm2, %v3059_v43  ;;  %v3080_v8 = vpack.c.bf16 %v355_v61, %v355_v61 }
  0xc3   : > { %772 = vrot.lane.b32.xlu2 %v3015_v54, %s2653_s22  ;;  %418 = vst.msk [vmem:[#allocation3 + $0x5c] sm:$0xf] %vm394_vm2, %v3064_v47 }
  0xc4   : > { %420 = vst.msk [vmem:[#allocation3 + $0x64] sm:$0xf] %vm394_vm2, %v3080_v8 }
  0xc5   : > { %782 = vrot.lane.b32.xlu1 %v701_v63, %s2653_s22  ;;  %v546_v4 = vpop.permute.xlu2 %545  ;;  %v357_v63 = vld [vmem:[#allocation2 + $0x140] sm:$0xff] }
  0xc6   : > { %786 = vrot.lane.b32.xlu0 %v703_v0, %s2653_s22  ;;  %631 = vst.msk [vmem:[#allocation3 + $0x2c] sm:$0xf] %vm619_vm3, %v546_v4  ;;  %v356_v0 = vld [vmem:[#allocation2 + $0x138] sm:$0xff]  ;;  %v3078_v4 = vpack.c.bf16 %v673_v51, %v673_v51  ;;  %v3082_v10 = vpack.c.bf16 %v357_v63, %v357_v63  ;;  %v361_v63 = vld [vmem:[#allocation2 + $0x170] sm:$0xff] }
  0xc7   : > { %v538_v12 = vpop.permute.xlu1 %537 }
  0xc8   : > { %627 = vst.msk [vmem:[#allocation3 + $0x1c] sm:$0xf] %vm619_vm3, %v538_v12  ;;  %v542_v18 = vpop.permute.xlu0 %541  ;;  %v3085_v12 = vpack.c.bf16 %v356_v0, %v356_v0 }
  0xc9   : > { %629 = vst.msk [vmem:[#allocation3 + $0x24] sm:$0xf] %vm619_vm3, %v542_v18  ;;  %v712_v18 = vpack.c.bf16 %v680_v3, %v680_v3  ;;  %v3122_v3 = vpack.c.bf16 %v361_v63, %v361_v63 }
  0xca   : > { %422 = vst.msk [vmem:[#allocation3 + $0x6c] sm:$0xf] %vm394_vm2, %v3082_v10 }
  0xcb   : > { %778 = vrot.lane.b32.xlu2 %v3036_v14, %s2653_s22  ;;  %421 = vst.msk [vmem:[#allocation3 + $0x68] sm:$0xf] %vm394_vm2, %v3085_v12 }
  0xcc   : > { %426 = vst.msk [vmem:[#allocation3 + $0x7c] sm:$0xf] %vm394_vm2, %v3122_v3 }
  0xcd   : > { %788 = vrot.lane.b32.xlu1 %v704_v20, %s2653_s22  ;;  %v552_v30 = vpop.permute.xlu2 %551  ;;  %v676_v20 = vld [vmem:[#allocation2 + $0x122] sm:$0xff] }
  0xce   : > { %792 = vrot.lane.b32.xlu0 %v706_v26, %s2653_s22  ;;  %634 = vst.msk [vmem:[#allocation3 + $0x38] sm:$0xf] %vm619_vm3, %v552_v30  ;;  %v681_v26 = vld [vmem:[#allocation2 + $0x15a] sm:$0xff]  ;;  %v360_v30 = vld [vmem:[#allocation2 + $0x168] sm:$0xff] }
  0xcf   : > { %v544_v34 = vpop.permute.xlu1 %543  ;;  %v713_v51 = vpack.c.bf16 %v681_v26, %v681_v26 }
  0xd0   : > { %630 = vst.msk [vmem:[#allocation3 + $0x28] sm:$0xf] %vm619_vm3, %v544_v34  ;;  %v548_v46 = vpop.permute.xlu0 %547  ;;  %v3099_v34 = vpack.c.bf16 %v676_v20, %v676_v20 }
  0xd1   : > { %632 = vst.msk [vmem:[#allocation3 + $0x30] sm:$0xf] %vm619_vm3, %v548_v46  ;;  %v3103_v46 = vpack.c.bf16 %v360_v30, %v360_v30 }
  0xd3   : > { %784 = vrot.lane.b32.xlu2 %v3057_v41, %s2653_s22  ;;  %425 = vst.msk [vmem:[#allocation3 + $0x78] sm:$0xf] %vm394_vm2, %v3103_v46 }
  0xd5   : > { %794 = vrot.lane.b32.xlu1 %v707_v48, %s2653_s22  ;;  %v558_v53 = vpop.permute.xlu2 %557 }
  0xd6   : > { %798 = vrot.lane.b32.xlu0 %v709_v50, %s2653_s22  ;;  %637 = vst.msk [vmem:[#allocation3 + $0x44] sm:$0xf] %vm619_vm3, %v558_v53  ;;  %v3106_v50 = vpack.c.bf16 %v359_v31, %v359_v31  ;;  %v679_v53 = vld [vmem:[#allocation2 + $0x142] sm:$0xff]  ;;  %v295_v31 = vld [vmem:[%s2767_s21 + $0xf0] sm:$0xff] }
  0xd7   : > { %v550_v1 = vpop.permute.xlu1 %549  ;;  %328 = vst.msk [vmem:[#allocation2 + $0x181] sm:$0xff] %vm209_vm0, %v295_v31 }
  0xd8   : > { %633 = vst.msk [vmem:[#allocation3 + $0x34] sm:$0xf] %vm619_vm3, %v550_v1  ;;  %v554_v11 = vpop.permute.xlu0 %553  ;;  %v3120_v1 = vpack.c.bf16 %v679_v53, %v679_v53 }
  0xd9   : > { %635 = vst.msk [vmem:[#allocation3 + $0x3c] sm:$0xf] %vm619_vm3, %v554_v11 }
  0xda   : > { %424 = vst.msk [vmem:[#allocation3 + $0x74] sm:$0xf] %vm394_vm2, %v3106_v50 }
  0xdb   : > { %790 = vrot.lane.b32.xlu2 %v3078_v4, %s2653_s22 }
  0xdd   : > { %800 = vrot.lane.b32.xlu1 %v710_v13, %s2653_s22  ;;  %v564_v27 = vpop.permute.xlu2 %563  ;;  %v682_v13 = vld [vmem:[#allocation2 + $0x16a] sm:$0xff] }
  0xde   : > { %804 = vrot.lane.b32.xlu0 %v712_v18, %s2653_s22  ;;  %640 = vst.msk [vmem:[#allocation3 + $0x50] sm:$0xf] %vm619_vm3, %v564_v27  ;;  %v3135_v26 = vpack.c.bf16 %v682_v13, %v682_v13 }
  0xdf   : > { %v556_v32 = vpop.permute.xlu1 %555 }
  0xe0   : > { %636 = vst.msk [vmem:[#allocation3 + $0x40] sm:$0xf] %vm619_vm3, %v556_v32  ;;  %v560_v48 = vpop.permute.xlu0 %559  ;;  %v296_v32 = vld [vmem:[%s2767_s21 + $0xf8] sm:$0xff] }
  0xe1   : > { %638 = vst.msk [vmem:[#allocation3 + $0x48] sm:$0xf] %vm619_vm3, %v560_v48 }
  0xe2   : > { %329 = vst.msk [vmem:[#allocation2 + $0x189] sm:$0xff] %vm209_vm0, %v296_v32  ;;  %v1116_v32 = vld [vmem:[#allocation2 + $0xc1] sm:$0xff] }
  0xe3   : > { %796 = vrot.lane.b32.xlu2 %v3099_v34, %s2653_s22 }
  0xe5   : > { %806 = vrot.lane.b32.xlu1 %v713_v51, %s2653_s22  ;;  %v570_v61 = vpop.permute.xlu2 %569 }
  0xe6   : > { %810 = vrot.lane.b32.xlu0 %v715_v52, %s2653_s22  ;;  %643 = vst.msk [vmem:[#allocation3 + $0x5c] sm:$0xf] %vm619_vm3, %v570_v61  ;;  %v1103_v52 = vld [vmem:[#allocation2 + $0x21] sm:$0xff] }
  0xe7   : > { %v562_v0 = vpop.permute.xlu1 %561  ;;  %v1135_v63 = vpack.c.bf16 %v1103_v52, %v1103_v52 }
  0xe8   : > { %639 = vst.msk [vmem:[#allocation3 + $0x4c] sm:$0xf] %vm619_vm3, %v562_v0  ;;  %v566_v11 = vpop.permute.xlu0 %565 }
  0xe9   : > { %641 = vst.msk [vmem:[#allocation3 + $0x54] sm:$0xf] %vm619_vm3, %v566_v11 }
  0xeb   : > { %802 = vrot.lane.b32.xlu2 %v3120_v1, %s2653_s22 }
  0xed   : > { %973 = vrot.lane.b32.xlu1 %v2932_v42, %s2654_s23  ;;  %v576_v18 = vpop.permute.xlu2 %575 }
  0xee   : > { %977 = vrot.lane.b32.xlu0 %v2934_v44, %s2654_s23  ;;  %646 = vst.msk [vmem:[#allocation3 + $0x68] sm:$0xf] %vm619_vm3, %v576_v18 }
  0xef   : > { %v568_v20 = vpop.permute.xlu1 %567 }
  0xf0   : > { %642 = vst.msk [vmem:[#allocation3 + $0x58] sm:$0xf] %vm619_vm3, %v568_v20  ;;  %v572_v27 = vpop.permute.xlu0 %571 }
  0xf1   : > { %644 = vst.msk [vmem:[#allocation3 + $0x60] sm:$0xf] %vm619_vm3, %v572_v27 }
  0xf3   : > { %808 = vrot.lane.b32.xlu2 %v3135_v26, %s2653_s22 }
  0xf5   : > { %979 = vrot.lane.b32.xlu1 %v2948_v57, %s2654_s23  ;;  %v582_v42 = vpop.permute.xlu2 %581 }
  0xf6   : > { %983 = vrot.lane.b32.xlu0 %v2959_v5, %s2654_s23  ;;  %649 = vst.msk [vmem:[#allocation3 + $0x74] sm:$0xf] %vm619_vm3, %v582_v42 }
  0xf7   : > { %v574_v44 = vpop.permute.xlu1 %573 }
  0xf8   : > { %645 = vst.msk [vmem:[#allocation3 + $0x64] sm:$0xf] %vm619_vm3, %v574_v44  ;;  %v578_v28 = vpop.permute.xlu0 %577 }
  0xf9   : > { %647 = vst.msk [vmem:[#allocation3 + $0x6c] sm:$0xf] %vm619_vm3, %v578_v28 }
  0xfb   : > { %975 = vrot.lane.b32.xlu2 %v2944_v55, %s2654_s23 }
  0xfd   : > { %985 = vrot.lane.b32.xlu1 %v2963_v7, %s2654_s23  ;;  %v749_v57 = vpop.permute.xlu2 %748 }
  0xfe   : > { %989 = vrot.lane.b32.xlu0 %v2979_v23, %s2654_s23  ;;  %845 = vst.msk [vmem:[#allocation3] sm:$0xf] %vm844_vm4, %v749_v57 }
  0xff   : > { %v580_v5 = vpop.permute.xlu1 %579 }
 0x100   : > { %648 = vst.msk [vmem:[#allocation3 + $0x70] sm:$0xf] %vm619_vm3, %v580_v5  ;;  %v584_v30 = vpop.permute.xlu0 %583  ;;  %v1107_v5 = vld [vmem:[#allocation2 + $0x51] sm:$0xff] }
 0x101   : > { %650 = vst.msk [vmem:[#allocation3 + $0x78] sm:$0xf] %vm619_vm3, %v584_v30 }
 0x103   : > { %981 = vrot.lane.b32.xlu2 %v2946_v56, %s2654_s23 }
 0x105   : > { %991 = vrot.lane.b32.xlu1 %v2983_v25, %s2654_s23  ;;  %v755_v55 = vpop.permute.xlu2 %754 }
 0x106   : > { %995 = vrot.lane.b32.xlu0 %v2998_v37, %s2654_s23  ;;  %848 = vst.msk [vmem:[#allocation3 + $0xc] sm:$0xf] %vm844_vm4, %v755_v55 }
 0x107   : > { %v586_v7 = vpop.permute.xlu1 %585 }
 0x108   : > { %651 = vst.msk [vmem:[#allocation3 + $0x7c] sm:$0xf] %vm619_vm3, %v586_v7  ;;  %v751_v23 = vpop.permute.xlu0 %750  ;;  %v1139_v7 = vpack.c.bf16 %v1107_v5, %v1107_v5  ;;  %v1128_v5 = vld [vmem:[#allocation2 + $0x151] sm:$0xff] }
 0x109   : > { %846 = vst.msk [vmem:[#allocation3 + $0x4] sm:$0xf] %vm844_vm4, %v751_v23 }
 0x10b   : > { %987 = vrot.lane.b32.xlu2 %v2961_v6, %s2654_s23 }
 0x10d   : > { %997 = vrot.lane.b32.xlu1 %v3002_v39, %s2654_s23  ;;  %v761_v56 = vpop.permute.xlu2 %760 }
 0x10e   : > { %1001 = vrot.lane.b32.xlu0 %v3017_v59, %s2654_s23  ;;  %851 = vst.msk [vmem:[#allocation3 + $0x18] sm:$0xf] %vm844_vm4, %v761_v56 }
 0x10f   : > { %v753_v25 = vpop.permute.xlu1 %752 }
 0x110   : > { %847 = vst.msk [vmem:[#allocation3 + $0x8] sm:$0xf] %vm844_vm4, %v753_v25  ;;  %v757_v37 = vpop.permute.xlu0 %756  ;;  %v1110_v25 = vld [vmem:[#allocation2 + $0x79] sm:$0xff] }
 0x111   : > { %849 = vst.msk [vmem:[#allocation3 + $0x10] sm:$0xf] %vm844_vm4, %v757_v37 }
 0x113   : > { %993 = vrot.lane.b32.xlu2 %v2981_v24, %s2654_s23 }
 0x115   : > { %1003 = vrot.lane.b32.xlu1 %v3022_v62, %s2654_s23  ;;  %v767_v6 = vpop.permute.xlu2 %766 }
 0x116   : > { %1007 = vrot.lane.b32.xlu0 %v3038_v15, %s2654_s23  ;;  %854 = vst.msk [vmem:[#allocation3 + $0x24] sm:$0xf] %vm844_vm4, %v767_v6  ;;  %v1142_v6 = vpack.c.bf16 %v1110_v25, %v1110_v25 }
 0x117   : > { %v759_v39 = vpop.permute.xlu1 %758 }
 0x118   : > { %850 = vst.msk [vmem:[#allocation3 + $0x14] sm:$0xf] %vm844_vm4, %v759_v39  ;;  %v763_v59 = vpop.permute.xlu0 %762 }
 0x119   : > { %852 = vst.msk [vmem:[#allocation3 + $0x1c] sm:$0xf] %vm844_vm4, %v763_v59 }
 0x11b   : > { %999 = vrot.lane.b32.xlu2 %v3000_v38, %s2654_s23 }
 0x11d   : > { %1009 = vrot.lane.b32.xlu1 %v3043_v19, %s2654_s23  ;;  %v773_v24 = vpop.permute.xlu2 %772 }
 0x11e   : > { %1013 = vrot.lane.b32.xlu0 %v3059_v43, %s2654_s23  ;;  %857 = vst.msk [vmem:[#allocation3 + $0x30] sm:$0xf] %vm844_vm4, %v773_v24  ;;  %v1113_v24 = vld [vmem:[#allocation2 + $0x99] sm:$0xff] }
 0x11f   : > { %v765_v62 = vpop.permute.xlu1 %764 }
 0x120   : > { %853 = vst.msk [vmem:[#allocation3 + $0x20] sm:$0xf] %vm844_vm4, %v765_v62  ;;  %v769_v15 = vpop.permute.xlu0 %768 }
 0x121   : > { %855 = vst.msk [vmem:[#allocation3 + $0x28] sm:$0xf] %vm844_vm4, %v769_v15 }
 0x123   : > { %1005 = vrot.lane.b32.xlu2 %v3019_v60, %s2654_s23 }
 0x125   : > { %1015 = vrot.lane.b32.xlu1 %v3064_v47, %s2654_s23  ;;  %v779_v38 = vpop.permute.xlu2 %778 }
 0x126   : > { %1019 = vrot.lane.b32.xlu0 %v3080_v8, %s2654_s23  ;;  %860 = vst.msk [vmem:[#allocation3 + $0x3c] sm:$0xf] %vm844_vm4, %v779_v38  ;;  %v1145_v38 = vpack.c.bf16 %v1113_v24, %v1113_v24 }
 0x127   : > { %v771_v19 = vpop.permute.xlu1 %770 }
 0x128   : > { %856 = vst.msk [vmem:[#allocation3 + $0x2c] sm:$0xf] %vm844_vm4, %v771_v19  ;;  %v775_v43 = vpop.permute.xlu0 %774 }
 0x129   : > { %858 = vst.msk [vmem:[#allocation3 + $0x34] sm:$0xf] %vm844_vm4, %v775_v43 }
 0x12b   : > { %1011 = vrot.lane.b32.xlu2 %v3040_v17, %s2654_s23 }
 0x12d   : > { %1021 = vrot.lane.b32.xlu1 %v3085_v12, %s2654_s23  ;;  %v785_v60 = vpop.permute.xlu2 %784  ;;  %v907_v12 = vld [vmem:[#allocation2 + $0x180] sm:$0xff] }
 0x12e   : > { %1025 = vrot.lane.b32.xlu0 %v3101_v35, %s2654_s23  ;;  %863 = vst.msk [vmem:[#allocation3 + $0x48] sm:$0xf] %vm844_vm4, %v785_v60  ;;  %v1102_v35 = vld [vmem:[#allocation2 + $0x19] sm:$0xff]  ;;  %v3224_v51 = vpack.c.bf16 %v907_v12, %v907_v12 }
 0x12f   : > { %v777_v47 = vpop.permute.xlu1 %776 }
 0x130   : > { %859 = vst.msk [vmem:[#allocation3 + $0x38] sm:$0xf] %vm844_vm4, %v777_v47  ;;  %v781_v8 = vpop.permute.xlu0 %780 }
 0x131   : > { %861 = vst.msk [vmem:[#allocation3 + $0x40] sm:$0xf] %vm844_vm4, %v781_v8  ;;  %v3284_v8 = vpack.c.bf16 %v1116_v32, %v1116_v32 }
 0x133   : > { %1017 = vrot.lane.b32.xlu2 %v3061_v45, %s2654_s23  ;;  %v1134_v45 = vpack.c.bf16 %v1102_v35, %v1102_v35 }
 0x135   : > { %1027 = vrot.lane.b32.xlu1 %v3106_v50, %s2654_s23  ;;  %v791_v17 = vpop.permute.xlu2 %790 }
 0x136   : > { %1031 = vrot.lane.b32.xlu0 %v3122_v3, %s2654_s23  ;;  %866 = vst.msk [vmem:[#allocation3 + $0x54] sm:$0xf] %vm844_vm4, %v791_v17  ;;  %v1106_v3 = vld [vmem:[#allocation2 + $0x49] sm:$0xff] }
 0x137   : > { %v783_v33 = vpop.permute.xlu1 %782  ;;  %v1138_v20 = vpack.c.bf16 %v1106_v3, %v1106_v3 }
 0x138   : > { %862 = vst.msk [vmem:[#allocation3 + $0x44] sm:$0xf] %vm844_vm4, %v783_v33  ;;  %v787_v48 = vpop.permute.xlu0 %786  ;;  %v1119_v33 = vld [vmem:[#allocation2 + $0xe1] sm:$0xff] }
 0x139   : > { %864 = vst.msk [vmem:[#allocation3 + $0x4c] sm:$0xf] %vm844_vm4, %v787_v48 }
 0x13b   : > { %1023 = vrot.lane.b32.xlu2 %v3082_v10, %s2654_s23  ;;  %v908_v10 = vld [vmem:[#allocation2 + $0x188] sm:$0xff] }
 0x13c   : > { %v3240_v13 = vpack.c.bf16 %v908_v10, %v908_v10  ;;  %v1129_v10 = vld [vmem:[#allocation2 + $0x159] sm:$0xff] }
 0x13d   : > { %1033 = vrot.lane.b32.xlu1 %v3224_v51, %s2654_s23  ;;  %v797_v50 = vpop.permute.xlu2 %796 }
 0x13e   : > { %1198 = vrot.lane.b32.xlu0 %v1134_v45, %s2655_s24  ;;  %869 = vst.msk [vmem:[#allocation3 + $0x60] sm:$0xf] %vm844_vm4, %v797_v50  ;;  %v3294_v45 = vpack.c.bf16 %v1119_v33, %v1119_v33 }
 0x13f   : > { %v789_v53 = vpop.permute.xlu1 %788 }
 0x140   : > { %865 = vst.msk [vmem:[#allocation3 + $0x50] sm:$0xf] %vm844_vm4, %v789_v53  ;;  %v793_v61 = vpop.permute.xlu0 %792  ;;  %v1122_v53 = vld [vmem:[#allocation2 + $0x109] sm:$0xff] }
 0x141   : > { %867 = vst.msk [vmem:[#allocation3 + $0x58] sm:$0xf] %vm844_vm4, %v793_v61 }
 0x143   : > { %1029 = vrot.lane.b32.xlu2 %v3103_v46, %s2654_s23  ;;  %v1104_v46 = vld [vmem:[#allocation2 + $0x31] sm:$0xff] }
 0x144   : > { %v1136_v44 = vpack.c.bf16 %v1104_v46, %v1104_v46  ;;  %v1130_v46 = vld [vmem:[#allocation2 + $0x169] sm:$0xff] }
 0x145   : > { %1200 = vrot.lane.b32.xlu1 %v1135_v63, %s2655_s24  ;;  %v803_v0 = vpop.permute.xlu2 %802 }
 0x146   : > { %1204 = vrot.lane.b32.xlu0 %v2862_v40, %s2655_s24  ;;  %872 = vst.msk [vmem:[#allocation3 + $0x6c] sm:$0xf] %vm844_vm4, %v803_v0  ;;  %v1109_v40 = vld [vmem:[#allocation2 + $0x69] sm:$0xff]  ;;  %v1154_v0 = vpack.c.bf16 %v1122_v53, %v1122_v53 }
 0x147   : > { %v795_v11 = vpop.permute.xlu1 %794  ;;  %v1141_v57 = vpack.c.bf16 %v1109_v40, %v1109_v40  ;;  %v1132_v40 = vld [vmem:[#allocation2 + $0x181] sm:$0xff] }
 0x148   : > { %868 = vst.msk [vmem:[#allocation3 + $0x5c] sm:$0xf] %vm844_vm4, %v795_v11  ;;  %v799_v18 = vpop.permute.xlu0 %798 }
 0x149   : > { %870 = vst.msk [vmem:[#allocation3 + $0x64] sm:$0xf] %vm844_vm4, %v799_v18  ;;  %v3306_v18 = vpack.c.bf16 %v1129_v10, %v1129_v10  ;;  %v1336_v10 = vld [vmem:[#allocation2 + $0x82] sm:$0xff] }
 0x14b   : > { %1035 = vrot.lane.b32.xlu2 %v3240_v13, %s2654_s23 }
 0x14d   : > { %1206 = vrot.lane.b32.xlu1 %v1138_v20, %s2655_s24  ;;  %v809_v27 = vpop.permute.xlu2 %808  ;;  %v1125_v20 = vld [vmem:[#allocation2 + $0x129] sm:$0xff] }
 0x14e   : > { %1210 = vrot.lane.b32.xlu0 %v2874_v49, %s2655_s24  ;;  %875 = vst.msk [vmem:[#allocation3 + $0x78] sm:$0xf] %vm844_vm4, %v809_v27  ;;  %v1112_v49 = vld [vmem:[#allocation2 + $0x91] sm:$0xff] }
 0x14f   : > { %v801_v42 = vpop.permute.xlu1 %800  ;;  %v1144_v56 = vpack.c.bf16 %v1112_v49, %v1112_v49  ;;  %v1133_v49 = vld [vmem:[#allocation2 + $0x189] sm:$0xff] }
 0x150   : > { %871 = vst.msk [vmem:[#allocation3 + $0x68] sm:$0xf] %vm844_vm4, %v801_v42  ;;  %v805_v28 = vpop.permute.xlu0 %804  ;;  %v1157_v42 = vpack.c.bf16 %v1125_v20, %v1125_v20  ;;  %v3329_v25 = vpack.c.bf16 %v1133_v49, %v1133_v49  ;;  %v1347_v49 = vld [vmem:[#allocation2 + $0x10a] sm:$0xff] }
 0x151   : > { %873 = vst.msk [vmem:[#allocation3 + $0x70] sm:$0xf] %vm844_vm4, %v805_v28  ;;  %v3315_v28 = vpack.c.bf16 %v1130_v46, %v1130_v46  ;;  %v1339_v46 = vld [vmem:[#allocation2 + $0xaa] sm:$0xff] }
 0x153   : > { %1202 = vrot.lane.b32.xlu2 %v1136_v44, %s2655_s24 }
 0x155   : > { %1212 = vrot.lane.b32.xlu1 %v1141_v57, %s2655_s24  ;;  %v976_v30 = vpop.permute.xlu2 %975  ;;  %v3317_v57 = vpack.c.bf16 %v1132_v40, %v1132_v40 }
 0x156   : > { %1216 = vrot.lane.b32.xlu0 %v2886_v58, %s2655_s24  ;;  %1071 = vst.msk [vmem:[#allocation3 + $0x4] sm:$0xf] %vm1069_vm5, %v976_v30  ;;  %v1115_v58 = vld [vmem:[#allocation2 + $0xb1] sm:$0xff] }
 0x157   : > { %v807_v55 = vpop.permute.xlu1 %806  ;;  %v3266_v59 = vpack.c.bf16 %v1115_v58, %v1115_v58  ;;  %v1131_v58 = vld [vmem:[#allocation2 + $0x171] sm:$0xff] }
 0x158   : > { %874 = vst.msk [vmem:[#allocation3 + $0x74] sm:$0xf] %vm844_vm4, %v807_v55  ;;  %v811_v23 = vpop.permute.xlu0 %810  ;;  %v3337_v24 = vpack.c.bf16 %v1131_v58, %v1131_v58  ;;  %v1345_v58 = vld [vmem:[#allocation2 + $0xf2] sm:$0xff] }
 0x159   : > { %876 = vst.msk [vmem:[#allocation3 + $0x7c] sm:$0xf] %vm844_vm4, %v811_v23  ;;  %v3325_v23 = vpack.c.bf16 %v1128_v5, %v1128_v5 }
 0x15b   : > { %1208 = vrot.lane.b32.xlu2 %v1139_v7, %s2655_s24  ;;  %v1328_v7 = vld [vmem:[#allocation2 + $0x22] sm:$0xff] }
 0x15d   : > { %1218 = vrot.lane.b32.xlu1 %v1144_v56, %s2655_s24  ;;  %v982_v37 = vpop.permute.xlu2 %981 }
 0x15e   : > { %1222 = vrot.lane.b32.xlu0 %v2896_v2, %s2655_s24  ;;  %1074 = vst.msk [vmem:[#allocation3 + $0x10] sm:$0xf] %vm1069_vm5, %v982_v37  ;;  %v1118_v2 = vld [vmem:[#allocation2 + $0xd9] sm:$0xff]  ;;  %v1360_v37 = vpack.c.bf16 %v1328_v7, %v1328_v7 }
 0x15f   : > { %v974_v31 = vpop.permute.xlu1 %973  ;;  %v3276_v43 = vpack.c.bf16 %v1118_v2, %v1118_v2 }
 0x160   : > { %1070 = vst.msk [vmem:[#allocation3] sm:$0xf] %vm1069_vm5, %v974_v31  ;;  %v978_v39 = vpop.permute.xlu0 %977 }
 0x161   : > { %1072 = vst.msk [vmem:[#allocation3 + $0x8] sm:$0xf] %vm1069_vm5, %v978_v39 }
 0x163   : > { %1214 = vrot.lane.b32.xlu2 %v1142_v6, %s2655_s24  ;;  %v1329_v6 = vld [vmem:[#allocation2 + $0x32] sm:$0xff] }
 0x164   : > { %v1361_v2 = vpack.c.bf16 %v1329_v6, %v1329_v6 }
 0x165   : > { %1224 = vrot.lane.b32.xlu1 %v3266_v59, %s2655_s24  ;;  %v988_v62 = vpop.permute.xlu2 %987 }
 0x166   : > { %1228 = vrot.lane.b32.xlu0 %v2904_v9, %s2655_s24  ;;  %1077 = vst.msk [vmem:[#allocation3 + $0x1c] sm:$0xf] %vm1069_vm5, %v988_v62  ;;  %v1121_v9 = vld [vmem:[#allocation2 + $0xf9] sm:$0xff] }
 0x167   : > { %v980_v15 = vpop.permute.xlu1 %979  ;;  %v1153_v12 = vpack.c.bf16 %v1121_v9, %v1121_v9 }
 0x168   : > { %1073 = vst.msk [vmem:[#allocation3 + $0xc] sm:$0xf] %vm1069_vm5, %v980_v15  ;;  %v984_v19 = vpop.permute.xlu0 %983  ;;  %v1327_v15 = vld [vmem:[#allocation2 + $0x1a] sm:$0xff] }
 0x169   : > { %1075 = vst.msk [vmem:[#allocation3 + $0x14] sm:$0xf] %vm1069_vm5, %v984_v19  ;;  %v1332_v19 = vld [vmem:[#allocation2 + $0x52] sm:$0xff] }
 0x16b   : > { %1220 = vrot.lane.b32.xlu2 %v1145_v38, %s2655_s24 }
 0x16d   : > { %1230 = vrot.lane.b32.xlu1 %v3276_v43, %s2655_s24  ;;  %v994_v60 = vpop.permute.xlu2 %993 }
 0x16e   : > { %1234 = vrot.lane.b32.xlu0 %v2912_v16, %s2655_s24  ;;  %1080 = vst.msk [vmem:[#allocation3 + $0x28] sm:$0xf] %vm1069_vm5, %v994_v60  ;;  %v1124_v16 = vld [vmem:[#allocation2 + $0x121] sm:$0xff]  ;;  %v1359_v60 = vpack.c.bf16 %v1327_v15, %v1327_v15  ;;  %v1348_v15 = vld [vmem:[#allocation2 + $0x112] sm:$0xff] }
 0x16f   : > { %v986_v47 = vpop.permute.xlu1 %985  ;;  %v1156_v52 = vpack.c.bf16 %v1124_v16, %v1124_v16 }
 0x170   : > { %1076 = vst.msk [vmem:[#allocation3 + $0x18] sm:$0xf] %vm1069_vm5, %v986_v47  ;;  %v990_v17 = vpop.permute.xlu0 %989  ;;  %v1364_v47 = vpack.c.bf16 %v1332_v19, %v1332_v19 }
 0x171   : > { %1078 = vst.msk [vmem:[#allocation3 + $0x20] sm:$0xf] %vm1069_vm5, %v990_v17  ;;  %v1330_v17 = vld [vmem:[#allocation2 + $0x3a] sm:$0xff] }
 0x173   : > { %1226 = vrot.lane.b32.xlu2 %v3284_v8, %s2655_s24 }
 0x175   : > { %1236 = vrot.lane.b32.xlu1 %v1153_v12, %s2655_s24  ;;  %v1000_v35 = vpop.permute.xlu2 %999 }
 0x176   : > { %1240 = vrot.lane.b32.xlu0 %v2918_v22, %s2655_s24  ;;  %1083 = vst.msk [vmem:[#allocation3 + $0x34] sm:$0xf] %vm1069_vm5, %v1000_v35  ;;  %v1127_v22 = vld [vmem:[#allocation2 + $0x141] sm:$0xff]  ;;  %v1362_v35 = vpack.c.bf16 %v1330_v17, %v1330_v17 }
 0x177   : > { %v992_v48 = vpop.permute.xlu1 %991  ;;  %v1159_v11 = vpack.c.bf16 %v1127_v22, %v1127_v22 }
 0x178   : > { %1079 = vst.msk [vmem:[#allocation3 + $0x24] sm:$0xf] %vm1069_vm5, %v992_v48  ;;  %v996_v50 = vpop.permute.xlu0 %995 }
 0x179   : > { %1081 = vst.msk [vmem:[#allocation3 + $0x2c] sm:$0xf] %vm1069_vm5, %v996_v50  ;;  %v1333_v50 = vld [vmem:[#allocation2 + $0x62] sm:$0xff] }
 0x17b   : > { %1232 = vrot.lane.b32.xlu2 %v3294_v45, %s2655_s24 }
 0x17d   : > { %1242 = vrot.lane.b32.xlu1 %v1156_v52, %s2655_s24  ;;  %v1006_v61 = vpop.permute.xlu2 %1005  ;;  %v1338_v52 = vld [vmem:[#allocation2 + $0x9a] sm:$0xff] }
 0x17e   : > { %1246 = vrot.lane.b32.xlu0 %v2924_v29, %s2655_s24  ;;  %1086 = vst.msk [vmem:[#allocation3 + $0x40] sm:$0xf] %vm1069_vm5, %v1006_v61  ;;  %v3364_v61 = vpack.c.bf16 %v1333_v50, %v1333_v50 }
 0x17f   : > { %v998_v63 = vpop.permute.xlu1 %997 }
 0x180   : > { %1082 = vst.msk [vmem:[#allocation3 + $0x30] sm:$0xf] %vm1069_vm5, %v998_v63  ;;  %v1002_v3 = vpop.permute.xlu0 %1001  ;;  %v3368_v63 = vpack.c.bf16 %v1338_v52, %v1338_v52  ;;  %v1553_v52 = vld [vmem:[#allocation2 + $0x30] sm:$0xff] }
 0x181   : > { %1084 = vst.msk [vmem:[#allocation3 + $0x38] sm:$0xf] %vm1069_vm5, %v1002_v3 }
 0x183   : > { %1238 = vrot.lane.b32.xlu2 %v1154_v0, %s2655_s24  ;;  %v1341_v0 = vld [vmem:[#allocation2 + $0xc2] sm:$0xff] }
 0x185   : > { %1248 = vrot.lane.b32.xlu1 %v1159_v11, %s2655_s24  ;;  %v1012_v29 = vpop.permute.xlu2 %1011  ;;  %v3377_v11 = vpack.c.bf16 %v1336_v10, %v1336_v10 }
 0x186   : > { %1252 = vrot.lane.b32.xlu0 %v3306_v18, %s2655_s24  ;;  %1089 = vst.msk [vmem:[#allocation3 + $0x4c] sm:$0xf] %vm1069_vm5, %v1012_v29  ;;  %v3381_v29 = vpack.c.bf16 %v1341_v0, %v1341_v0  ;;  %v1585_v0 = vpack.c.bf16 %v1553_v52, %v1553_v52 }
 0x187   : > { %v1004_v27 = vpop.permute.xlu1 %1003 }
 0x188   : > { %1085 = vst.msk [vmem:[#allocation3 + $0x3c] sm:$0xf] %vm1069_vm5, %v1004_v27  ;;  %v1008_v44 = vpop.permute.xlu0 %1007  ;;  %v1344_v27 = vld [vmem:[#allocation2 + $0xe2] sm:$0xff] }
 0x189   : > { %1087 = vst.msk [vmem:[#allocation3 + $0x44] sm:$0xf] %vm1069_vm5, %v1008_v44  ;;  %v3394_v5 = vpack.c.bf16 %v1344_v27, %v1344_v27 }
 0x18b   : > { %1244 = vrot.lane.b32.xlu2 %v1157_v42, %s2655_s24  ;;  %v3390_v42 = vpack.c.bf16 %v1339_v46, %v1339_v46 }
 0x18d   : > { %1254 = vrot.lane.b32.xlu1 %v3315_v28, %s2655_s24  ;;  %v1018_v30 = vpop.permute.xlu2 %1017 }
 0x18e   : > { %1258 = vrot.lane.b32.xlu0 %v3317_v57, %s2655_s24  ;;  %1092 = vst.msk [vmem:[#allocation3 + $0x58] sm:$0xf] %vm1069_vm5, %v1018_v30  ;;  %v1342_v30 = vld [vmem:[#allocation2 + $0xca] sm:$0xff] }
 0x18f   : > { %v1010_v55 = vpop.permute.xlu1 %1009  ;;  %v3403_v7 = vpack.c.bf16 %v1342_v30, %v1342_v30 }
 0x190   : > { %1088 = vst.msk [vmem:[#allocation3 + $0x48] sm:$0xf] %vm1069_vm5, %v1010_v55  ;;  %v1014_v56 = vpop.permute.xlu0 %1013 }
 0x191   : > { %1090 = vst.msk [vmem:[#allocation3 + $0x50] sm:$0xf] %vm1069_vm5, %v1014_v56 }
 0x193   : > { %1250 = vrot.lane.b32.xlu2 %v3325_v23, %s2655_s24 }
 0x195   : > { %1260 = vrot.lane.b32.xlu1 %v3329_v25, %s2655_s24  ;;  %v1024_v31 = vpop.permute.xlu2 %1023 }
 0x196   : > { %1425 = vrot.lane.b32.xlu0 %v1360_v37, %s2656_s25  ;;  %1095 = vst.msk [vmem:[#allocation3 + $0x64] sm:$0xf] %vm1069_vm5, %v1024_v31  ;;  %v3407_v37 = vpack.c.bf16 %v1347_v49, %v1347_v49  ;;  %v1350_v31 = vld [vmem:[#allocation2 + $0x12a] sm:$0xff] }
 0x197   : > { %v1016_v39 = vpop.permute.xlu1 %1015 }
 0x198   : > { %1091 = vst.msk [vmem:[#allocation3 + $0x54] sm:$0xf] %vm1069_vm5, %v1016_v39  ;;  %v1020_v62 = vpop.permute.xlu0 %1019  ;;  %v1377_v39 = vpack.c.bf16 %v1345_v58, %v1345_v58  ;;  %v1559_v58 = vld [vmem:[#allocation2 + $0x78] sm:$0xff] }
 0x199   : > { %1093 = vst.msk [vmem:[#allocation3 + $0x5c] sm:$0xf] %vm1069_vm5, %v1020_v62 }
 0x19b   : > { %1256 = vrot.lane.b32.xlu2 %v3337_v24, %s2655_s24 }
 0x19d   : > { %1427 = vrot.lane.b32.xlu1 %v1361_v2, %s2656_s25  ;;  %v1030_v38 = vpop.permute.xlu2 %1029  ;;  %v3418_v2 = vpack.c.bf16 %v1350_v31, %v1350_v31  ;;  %v1567_v31 = vld [vmem:[#allocation2 + $0xd8] sm:$0xff] }
 0x19e   : > { %1431 = vrot.lane.b32.xlu0 %v2977_v21, %s2656_s25  ;;  %1098 = vst.msk [vmem:[#allocation3 + $0x70] sm:$0xf] %vm1069_vm5, %v1030_v38  ;;  %v1335_v21 = vld [vmem:[#allocation2 + $0x7a] sm:$0xff] }
 0x19f   : > { %v1022_v32 = vpop.permute.xlu1 %1021  ;;  %v3356_v48 = vpack.c.bf16 %v1335_v21, %v1335_v21  ;;  %v1358_v21 = vld [vmem:[#allocation2 + $0x18a] sm:$0xff] }
 0x1a0   : > { %1094 = vst.msk [vmem:[#allocation3 + $0x60] sm:$0xf] %vm1069_vm5, %v1022_v32  ;;  %v1026_v9 = vpop.permute.xlu0 %1025  ;;  %v1380_v32 = vpack.c.bf16 %v1348_v15, %v1348_v15  ;;  %v3442_v50 = vpack.c.bf16 %v1358_v21, %v1358_v21  ;;  %v1599_v15 = vpack.c.bf16 %v1567_v31, %v1567_v31  ;;  %v1560_v21 = vld [vmem:[#allocation2 + $0x80] sm:$0xff] }
 0x1a1   : > { %1096 = vst.msk [vmem:[#allocation3 + $0x68] sm:$0xf] %vm1069_vm5, %v1026_v9  ;;  %v1592_v52 = vpack.c.bf16 %v1560_v21, %v1560_v21 }
 0x1a3   : > { %1423 = vrot.lane.b32.xlu2 %v1359_v60, %s2656_s25 }
 0x1a5   : > { %1433 = vrot.lane.b32.xlu1 %v1364_v47, %s2656_s25  ;;  %v1036_v12 = vpop.permute.xlu2 %1035  ;;  %v1351_v47 = vld [vmem:[#allocation2 + $0x13a] sm:$0xff] }
 0x1a6   : > { %1437 = vrot.lane.b32.xlu0 %v2996_v36, %s2656_s25  ;;  %1101 = vst.msk [vmem:[#allocation3 + $0x7c] sm:$0xf] %vm1069_vm5, %v1036_v12 }
 0x1a7   : > { %v1028_v33 = vpop.permute.xlu1 %1027 }
 0x1a8   : > { %1097 = vst.msk [vmem:[#allocation3 + $0x6c] sm:$0xf] %vm1069_vm5, %v1028_v33  ;;  %v1032_v16 = vpop.permute.xlu0 %1031  ;;  %v3436_v33 = vpack.c.bf16 %v1351_v47, %v1351_v47 }
 0x1a9   : > { %1099 = vst.msk [vmem:[#allocation3 + $0x74] sm:$0xf] %vm1069_vm5, %v1032_v16 }
 0x1ab   : > { %1429 = vrot.lane.b32.xlu2 %v1362_v35, %s2656_s25 }
 0x1ad   : > { %1439 = vrot.lane.b32.xlu1 %v3356_v48, %s2656_s25  ;;  %v1203_v36 = vpop.permute.xlu2 %1202 }
 0x1ae   : > { %1443 = vrot.lane.b32.xlu0 %v3015_v54, %s2656_s25  ;;  %1297 = vst.msk [vmem:[#allocation3 + $0x8] sm:$0xf] %vm1294_vm6, %v1203_v36 }
 0x1af   : > { %v1034_v53 = vpop.permute.xlu1 %1033 }
 0x1b0   : > { %1100 = vst.msk [vmem:[#allocation3 + $0x78] sm:$0xf] %vm1069_vm5, %v1034_v53  ;;  %v1199_v22 = vpop.permute.xlu0 %1198 }
 0x1b1   : > { %1295 = vst.msk [vmem:[#allocation3] sm:$0xf] %vm1294_vm6, %v1199_v22  ;;  %v1555_v22 = vld [vmem:[#allocation2 + $0x48] sm:$0xff] }
 0x1b3   : > { %1435 = vrot.lane.b32.xlu2 %v3364_v61, %s2656_s25 }
 0x1b5   : > { %1445 = vrot.lane.b32.xlu1 %v3368_v63, %s2656_s25  ;;  %v1209_v54 = vpop.permute.xlu2 %1208 }
 0x1b6   : > { %1449 = vrot.lane.b32.xlu0 %v3036_v14, %s2656_s25  ;;  %1300 = vst.msk [vmem:[#allocation3 + $0x14] sm:$0xf] %vm1294_vm6, %v1209_v54 }
 0x1b7   : > { %v1201_v3 = vpop.permute.xlu1 %1200 }
 0x1b8   : > { %1296 = vst.msk [vmem:[#allocation3 + $0x4] sm:$0xf] %vm1294_vm6, %v1201_v3  ;;  %v1205_v20 = vpop.permute.xlu0 %1204  ;;  %v1587_v3 = vpack.c.bf16 %v1555_v22, %v1555_v22 }
 0x1b9   : > { %1298 = vst.msk [vmem:[#allocation3 + $0xc] sm:$0xf] %vm1294_vm6, %v1205_v20  ;;  %v1357_v20 = vld [vmem:[#allocation2 + $0x182] sm:$0xff] }
 0x1bb   : > { %1441 = vrot.lane.b32.xlu2 %v3377_v11, %s2656_s25 }
 0x1bd   : > { %1451 = vrot.lane.b32.xlu1 %v3381_v29, %s2656_s25  ;;  %v1215_v14 = vpop.permute.xlu2 %1214 }
 0x1be   : > { %1455 = vrot.lane.b32.xlu0 %v3057_v41, %s2656_s25  ;;  %1303 = vst.msk [vmem:[#allocation3 + $0x20] sm:$0xf] %vm1294_vm6, %v1215_v14  ;;  %v1556_v14 = vld [vmem:[#allocation2 + $0x50] sm:$0xff] }
 0x1bf   : > { %v1207_v40 = vpop.permute.xlu1 %1206 }
 0x1c0   : > { %1299 = vst.msk [vmem:[#allocation3 + $0x10] sm:$0xf] %vm1294_vm6, %v1207_v40  ;;  %v1211_v44 = vpop.permute.xlu0 %1210  ;;  %v1558_v40 = vld [vmem:[#allocation2 + $0x68] sm:$0xff] }
 0x1c1   : > { %1301 = vst.msk [vmem:[#allocation3 + $0x18] sm:$0xf] %vm1294_vm6, %v1211_v44  ;;  %v3460_v44 = vpack.c.bf16 %v1357_v20, %v1357_v20  ;;  %v1590_v49 = vpack.c.bf16 %v1558_v40, %v1558_v40 }
 0x1c3   : > { %1447 = vrot.lane.b32.xlu2 %v3390_v42, %s2656_s25 }
 0x1c5   : > { %1457 = vrot.lane.b32.xlu1 %v3394_v5, %s2656_s25  ;;  %v1221_v41 = vpop.permute.xlu2 %1220 }
 0x1c6   : > { %1461 = vrot.lane.b32.xlu0 %v3078_v4, %s2656_s25  ;;  %1306 = vst.msk [vmem:[#allocation3 + $0x2c] sm:$0xf] %vm1294_vm6, %v1221_v41  ;;  %v1588_v41 = vpack.c.bf16 %v1556_v14, %v1556_v14 }
 0x1c7   : > { %v1213_v55 = vpop.permute.xlu1 %1212 }
 0x1c8   : > { %1302 = vst.msk [vmem:[#allocation3 + $0x1c] sm:$0xf] %vm1294_vm6, %v1213_v55  ;;  %v1217_v56 = vpop.permute.xlu0 %1216  ;;  %v1554_v55 = vld [vmem:[#allocation2 + $0x38] sm:$0xff] }
 0x1c9   : > { %1304 = vst.msk [vmem:[#allocation3 + $0x24] sm:$0xf] %vm1294_vm6, %v1217_v56 }
 0x1cb   : > { %1453 = vrot.lane.b32.xlu2 %v3403_v7, %s2656_s25 }
 0x1cd   : > { %1463 = vrot.lane.b32.xlu1 %v3407_v37, %s2656_s25  ;;  %v1227_v4 = vpop.permute.xlu2 %1226 }
 0x1ce   : > { %1467 = vrot.lane.b32.xlu0 %v3099_v34, %s2656_s25  ;;  %1309 = vst.msk [vmem:[#allocation3 + $0x38] sm:$0xf] %vm1294_vm6, %v1227_v4  ;;  %v1353_v34 = vld [vmem:[#allocation2 + $0x152] sm:$0xff] }
 0x1cf   : > { %v1219_v6 = vpop.permute.xlu1 %1218  ;;  %v3428_v9 = vpack.c.bf16 %v1353_v34, %v1353_v34 }
 0x1d0   : > { %1305 = vst.msk [vmem:[#allocation3 + $0x28] sm:$0xf] %vm1294_vm6, %v1219_v6  ;;  %v1223_v62 = vpop.permute.xlu0 %1222  ;;  %v1586_v6 = vpack.c.bf16 %v1554_v55, %v1554_v55 }
 0x1d1   : > { %1307 = vst.msk [vmem:[#allocation3 + $0x30] sm:$0xf] %vm1294_vm6, %v1223_v62  ;;  %v1591_v62 = vpack.c.bf16 %v1559_v58, %v1559_v58  ;;  %v2017_v58 = vld [vmem:[#allocation2 + $0xda] sm:$0xff] }
 0x1d3   : > { %1459 = vrot.lane.b32.xlu2 %v1377_v39, %s2656_s25 }
 0x1d5   : > { %1469 = vrot.lane.b32.xlu1 %v3418_v2, %s2656_s25  ;;  %v1233_v38 = vpop.permute.xlu2 %1232 }
 0x1d6   : > { %1473 = vrot.lane.b32.xlu0 %v3120_v1, %s2656_s25  ;;  %1312 = vst.msk [vmem:[#allocation3 + $0x44] sm:$0xf] %vm1294_vm6, %v1233_v38  ;;  %v1356_v1 = vld [vmem:[#allocation2 + $0x172] sm:$0xff]  ;;  %v1557_v38 = vld [vmem:[#allocation2 + $0x60] sm:$0xff] }
 0x1d7   : > { %v1225_v19 = vpop.permute.xlu1 %1224  ;;  %v3440_v16 = vpack.c.bf16 %v1356_v1, %v1356_v1  ;;  %v1589_v47 = vpack.c.bf16 %v1557_v38, %v1557_v38 }
 0x1d8   : > { %1308 = vst.msk [vmem:[#allocation3 + $0x34] sm:$0xf] %vm1294_vm6, %v1225_v19  ;;  %v1229_v60 = vpop.permute.xlu0 %1228  ;;  %v1568_v19 = vld [vmem:[#allocation2 + $0xe0] sm:$0xff] }
 0x1d9   : > { %1310 = vst.msk [vmem:[#allocation3 + $0x3c] sm:$0xf] %vm1294_vm6, %v1229_v60  ;;  %v1584_v60 = vld [vmem:[#allocation2 + $0x1a0] sm:$0xff]  ;;  %v1600_v1 = vpack.c.bf16 %v1568_v19, %v1568_v19 }
 0x1db   : > { %1465 = vrot.lane.b32.xlu2 %v1380_v32, %s2656_s25 }
 0x1dd   : > { %1475 = vrot.lane.b32.xlu1 %v3428_v9, %s2656_s25  ;;  %v1239_v17 = vpop.permute.xlu2 %1238 }
 0x1de   : > { %1479 = vrot.lane.b32.xlu0 %v3135_v26, %s2656_s25  ;;  %1315 = vst.msk [vmem:[#allocation3 + $0x50] sm:$0xf] %vm1294_vm6, %v1239_v17  ;;  %v1354_v26 = vld [vmem:[#allocation2 + $0x15a] sm:$0xff] }
 0x1df   : > { %v1231_v12 = vpop.permute.xlu1 %1230  ;;  %v3451_v10 = vpack.c.bf16 %v1354_v26, %v1354_v26 }
 0x1e0   : > { %1311 = vst.msk [vmem:[#allocation3 + $0x40] sm:$0xf] %vm1294_vm6, %v1231_v12  ;;  %v1235_v35 = vpop.permute.xlu0 %1234  ;;  %v1616_v12 = vpack.c.bf16 %v1584_v60, %v1584_v60 }
 0x1e1   : > { %1313 = vst.msk [vmem:[#allocation3 + $0x48] sm:$0xf] %vm1294_vm6, %v1235_v35 }
 0x1e3   : > { %1471 = vrot.lane.b32.xlu2 %v3436_v33, %s2656_s25 }
 0x1e5   : > { %1481 = vrot.lane.b32.xlu1 %v3440_v16, %s2656_s25  ;;  %v1245_v36 = vpop.permute.xlu2 %1244 }
 0x1e6   : > { %1485 = vrot.lane.b32.xlu0 %v3442_v50, %s2656_s25  ;;  %1318 = vst.msk [vmem:[#allocation3 + $0x5c] sm:$0xf] %vm1294_vm6, %v1245_v36  ;;  %v1808_v36 = vld [vmem:[#allocation2 + $0x199] sm:$0xff] }
 0x1e7   : > { %v1237_v53 = vpop.permute.xlu1 %1236  ;;  %v1840_v22 = vpack.c.bf16 %v1808_v36, %v1808_v36 }
 0x1e8   : > { %1314 = vst.msk [vmem:[#allocation3 + $0x4c] sm:$0xf] %vm1294_vm6, %v1237_v53  ;;  %v1241_v54 = vpop.permute.xlu0 %1240 }
 0x1e9   : > { %1316 = vst.msk [vmem:[#allocation3 + $0x54] sm:$0xf] %vm1294_vm6, %v1241_v54  ;;  %v1583_v54 = vld [vmem:[#allocation2 + $0x198] sm:$0xff] }
 0x1eb   : > { %1477 = vrot.lane.b32.xlu2 %v3451_v10, %s2656_s25 }
 0x1ed   : > { %1649 = vrot.lane.b32.xlu1 %v1585_v0, %s2657_s26  ;;  %v1251_v46 = vpop.permute.xlu2 %1250 }
 0x1ee   : > { %1653 = vrot.lane.b32.xlu0 %v1587_v3, %s2657_s26  ;;  %1321 = vst.msk [vmem:[#allocation3 + $0x68] sm:$0xf] %vm1294_vm6, %v1251_v46  ;;  %v1809_v3 = vld [vmem:[#allocation2 + $0x1a1] sm:$0xff]  ;;  %v1615_v46 = vpack.c.bf16 %v1583_v54, %v1583_v54 }
 0x1ef   : > { %v1243_v27 = vpop.permute.xlu1 %1242 }
 0x1f0   : > { %1317 = vst.msk [vmem:[#allocation3 + $0x58] sm:$0xf] %vm1294_vm6, %v1243_v27  ;;  %v1247_v30 = vpop.permute.xlu0 %1246  ;;  %v1841_v27 = vpack.c.bf16 %v1809_v3, %v1809_v3  ;;  %v1579_v3 = vld [vmem:[#allocation2 + $0x168] sm:$0xff] }
 0x1f1   : > { %1319 = vst.msk [vmem:[#allocation3 + $0x60] sm:$0xf] %vm1294_vm6, %v1247_v30 }
 0x1f3   : > { %1483 = vrot.lane.b32.xlu2 %v3460_v44, %s2656_s25 }
 0x1f5   : > { %1655 = vrot.lane.b32.xlu1 %v1588_v41, %s2657_s26  ;;  %v1257_v56 = vpop.permute.xlu2 %1256  ;;  %v1565_v41 = vld [vmem:[#allocation2 + $0xc0] sm:$0xff] }
 0x1f6   : > { %1659 = vrot.lane.b32.xlu0 %v1590_v49, %s2657_s26  ;;  %1324 = vst.msk [vmem:[#allocation3 + $0x74] sm:$0xf] %vm1294_vm6, %v1257_v56  ;;  %v1597_v56 = vpack.c.bf16 %v1565_v41, %v1565_v41 }
 0x1f7   : > { %v1249_v4 = vpop.permute.xlu1 %1248 }
 0x1f8   : > { %1320 = vst.msk [vmem:[#allocation3 + $0x64] sm:$0xf] %vm1294_vm6, %v1249_v4  ;;  %v1253_v39 = vpop.permute.xlu0 %1252 }
 0x1f9   : > { %1322 = vst.msk [vmem:[#allocation3 + $0x6c] sm:$0xf] %vm1294_vm6, %v1253_v39 }
 0x1fb   : > { %1651 = vrot.lane.b32.xlu2 %v1586_v6, %s2657_s26  ;;  %v2049_v6 = vpack.c.bf16 %v2017_v58, %v2017_v58 }
 0x1fd   : > { %1661 = vrot.lane.b32.xlu1 %v1591_v62, %s2657_s26  ;;  %v1424_v34 = vpop.permute.xlu2 %1423 }
 0x1fe   : > { %1677 = vrot.lane.b32.xlu0 %v1599_v15, %s2657_s26  ;;  %1520 = vst.msk [vmem:[#allocation3] sm:$0xf] %vm1519_vm7, %v1424_v34 }
 0x1ff   : > { %v1255_v32 = vpop.permute.xlu1 %1254 }
 0x200   : > { %1323 = vst.msk [vmem:[#allocation3 + $0x70] sm:$0xf] %vm1294_vm6, %v1255_v32  ;;  %v1259_v17 = vpop.permute.xlu0 %1258 }
 0x201   : > { %1325 = vst.msk [vmem:[#allocation3 + $0x78] sm:$0xf] %vm1294_vm6, %v1259_v17  ;;  %v1563_v17 = vld [vmem:[#allocation2 + $0xa8] sm:$0xff] }
 0x202   : > { %v1595_v21 = vpack.c.bf16 %v1563_v17, %v1563_v17  ;;  %v2011_v17 = vld [vmem:[#allocation2 + $0x92] sm:$0xff] }
 0x203   : > { %1657 = vrot.lane.b32.xlu2 %v1589_v47, %s2657_s26  ;;  %v1791_v47 = vld [vmem:[#allocation2 + $0xc9] sm:$0xff] }
 0x205   : > { %1679 = vrot.lane.b32.xlu1 %v1600_v1, %s2657_s26  ;;  %v1430_v35 = vpop.permute.xlu2 %1429  ;;  %v1823_v1 = vpack.c.bf16 %v1791_v47, %v1791_v47 }
 0x206   : > { %1711 = vrot.lane.b32.xlu0 %v1616_v12, %s2657_s26  ;;  %1523 = vst.msk [vmem:[#allocation3 + $0xc] sm:$0xf] %vm1519_vm7, %v1430_v35  ;;  %v1580_v35 = vld [vmem:[#allocation2 + $0x170] sm:$0xff] }
 0x207   : > { %v1261_v26 = vpop.permute.xlu1 %1260 }
 0x208   : > { %1326 = vst.msk [vmem:[#allocation3 + $0x7c] sm:$0xf] %vm1294_vm6, %v1261_v26  ;;  %v1426_v53 = vpop.permute.xlu0 %1425 }
 0x209   : > { %1521 = vst.msk [vmem:[#allocation3 + $0x4] sm:$0xf] %vm1519_vm7, %v1426_v53  ;;  %v1788_v53 = vld [vmem:[#allocation2 + $0xa9] sm:$0xff] }
 0x20b   : > { %1663 = vrot.lane.b32.xlu2 %v1592_v52, %s2657_s26  ;;  %v1612_v52 = vpack.c.bf16 %v1580_v35, %v1580_v35  ;;  %v1800_v35 = vld [vmem:[#allocation2 + $0x139] sm:$0xff] }
 0x20d   : > { %1902 = vrot.lane.b32.xlu1 %v3276_v43, %s2658_s27  ;;  %v1436_v0 = vpop.permute.xlu2 %1435  ;;  %v2033_v43 = vld [vmem:[#allocation2 + $0x19a] sm:$0xff] }
 0x20e   : > { %1934 = vrot.lane.b32.xlu0 %v1840_v22, %s2658_s27  ;;  %1526 = vst.msk [vmem:[#allocation3 + $0x18] sm:$0xf] %vm1519_vm7, %v1436_v0  ;;  %v2065_v55 = vpack.c.bf16 %v2033_v43, %v2033_v43  ;;  %v1820_v0 = vpack.c.bf16 %v1788_v53, %v1788_v53 }
 0x20f   : > { %v1428_v20 = vpop.permute.xlu1 %1427 }
 0x210   : > { %1522 = vst.msk [vmem:[#allocation3 + $0x8] sm:$0xf] %vm1519_vm7, %v1428_v20  ;;  %v1432_v14 = vpop.permute.xlu0 %1431 }
 0x211   : > { %1524 = vst.msk [vmem:[#allocation3 + $0x10] sm:$0xf] %vm1519_vm7, %v1432_v14  ;;  %v1611_v14 = vpack.c.bf16 %v1579_v3, %v1579_v3 }
 0x213   : > { %1709 = vrot.lane.b32.xlu2 %v1615_v46, %s2657_s26  ;;  %v2014_v46 = vld [vmem:[#allocation2 + $0xb2] sm:$0xff] }
 0x215   : > { %1936 = vrot.lane.b32.xlu1 %v1841_v27, %s2658_s27  ;;  %v1442_v40 = vpop.permute.xlu2 %1441 }
 0x216   : > { %2129 = vrot.lane.b32.xlu0 %v3394_v5, %s2659_s28  ;;  %1529 = vst.msk [vmem:[#allocation3 + $0x24] sm:$0xf] %vm1519_vm7, %v1442_v40  ;;  %v1566_v5 = vld [vmem:[#allocation2 + $0xc8] sm:$0xff]  ;;  %v2046_v40 = vpack.c.bf16 %v2014_v46, %v2014_v46 }
 0x217   : > { %v1434_v30 = vpop.permute.xlu1 %1433  ;;  %v1598_v62 = vpack.c.bf16 %v1566_v5, %v1566_v5  ;;  %v1801_v46 = vld [vmem:[#allocation2 + $0x141] sm:$0xff] }
 0x218   : > { %1525 = vst.msk [vmem:[#allocation3 + $0x14] sm:$0xf] %vm1519_vm7, %v1434_v30  ;;  %v1438_v49 = vpop.permute.xlu0 %1437  ;;  %v1561_v30 = vld [vmem:[#allocation2 + $0x90] sm:$0xff] }
 0x219   : > { %1527 = vst.msk [vmem:[#allocation3 + $0x1c] sm:$0xf] %vm1519_vm7, %v1438_v49 }
 0x21b   : > { %1904 = vrot.lane.b32.xlu2 %v3294_v45, %s2658_s27  ;;  %v2034_v45 = vld [vmem:[#allocation2 + $0x1a2] sm:$0xff] }
 0x21c   : > { %v2066_v34 = vpack.c.bf16 %v2034_v45, %v2034_v45 }
 0x21d   : > { %2159 = vrot.lane.b32.xlu1 %v2065_v55, %s2659_s28  ;;  %v1448_v4 = vpop.permute.xlu2 %1447  ;;  %v1593_v55 = vpack.c.bf16 %v1561_v30, %v1561_v30 }
 0x21e   : > { %1673 = vrot.lane.b32.xlu0 %v1597_v56, %s2657_s26  ;;  %1532 = vst.msk [vmem:[#allocation3 + $0x30] sm:$0xf] %vm1519_vm7, %v1448_v4  ;;  %v1562_v56 = vld [vmem:[#allocation2 + $0x98] sm:$0xff] }
 0x21f   : > { %v1440_v31 = vpop.permute.xlu1 %1439  ;;  %v1578_v4 = vld [vmem:[#allocation2 + $0x158] sm:$0xff] }
 0x220   : > { %1528 = vst.msk [vmem:[#allocation3 + $0x20] sm:$0xf] %vm1519_vm7, %v1440_v31  ;;  %v1444_v39 = vpop.permute.xlu0 %1443  ;;  %v1594_v31 = vpack.c.bf16 %v1562_v56, %v1562_v56  ;;  %v1799_v56 = vld [vmem:[#allocation2 + $0x129] sm:$0xff] }
 0x221   : > { %1530 = vst.msk [vmem:[#allocation3 + $0x28] sm:$0xf] %vm1519_vm7, %v1444_v39  ;;  %v1786_v39 = vld [vmem:[#allocation2 + $0x91] sm:$0xff] }
 0x223   : > { %2127 = vrot.lane.b32.xlu2 %v2049_v6, %s2659_s28  ;;  %v1610_v6 = vpack.c.bf16 %v1578_v4, %v1578_v4 }
 0x225   : > { %1675 = vrot.lane.b32.xlu1 %v1598_v62, %s2657_s26  ;;  %v1454_v15 = vpop.permute.xlu2 %1453 }
 0x226   : > { %1707 = vrot.lane.b32.xlu0 %v3240_v13, %s2657_s26  ;;  %1535 = vst.msk [vmem:[#allocation3 + $0x3c] sm:$0xf] %vm1519_vm7, %v1454_v15  ;;  %v1818_v15 = vpack.c.bf16 %v1786_v39, %v1786_v39  ;;  %v2023_v39 = vld [vmem:[#allocation2 + $0x122] sm:$0xff] }
 0x227   : > { %v1446_v38 = vpop.permute.xlu1 %1445 }
 0x228   : > { %1531 = vst.msk [vmem:[#allocation3 + $0x2c] sm:$0xf] %vm1519_vm7, %v1446_v38  ;;  %v1450_v19 = vpop.permute.xlu0 %1449  ;;  %v1577_v38 = vld [vmem:[#allocation2 + $0x150] sm:$0xff] }
 0x229   : > { %1533 = vst.msk [vmem:[#allocation3 + $0x34] sm:$0xf] %vm1519_vm7, %v1450_v19  ;;  %v1609_v19 = vpack.c.bf16 %v1577_v38, %v1577_v38 }
 0x22b   : > { %2161 = vrot.lane.b32.xlu2 %v2066_v34, %s2659_s28 }
 0x22d   : > { %1898 = vrot.lane.b32.xlu1 %v3284_v8, %s2658_s27  ;;  %v1460_v32 = vpop.permute.xlu2 %1459 }
 0x22e   : > { %1930 = vrot.lane.b32.xlu0 %v3317_v57, %s2658_s27  ;;  %1538 = vst.msk [vmem:[#allocation3 + $0x48] sm:$0xf] %vm1519_vm7, %v1460_v32 }
 0x22f   : > { %v1452_v13 = vpop.permute.xlu1 %1451 }
 0x230   : > { %1534 = vst.msk [vmem:[#allocation3 + $0x38] sm:$0xf] %vm1519_vm7, %v1452_v13  ;;  %v1456_v60 = vpop.permute.xlu0 %1455  ;;  %v1787_v13 = vld [vmem:[#allocation2 + $0x99] sm:$0xff] }
 0x231   : > { %1536 = vst.msk [vmem:[#allocation3 + $0x40] sm:$0xf] %vm1519_vm7, %v1456_v60  ;;  %v1575_v60 = vld [vmem:[#allocation2 + $0x138] sm:$0xff]  ;;  %v1819_v47 = vpack.c.bf16 %v1787_v13, %v1787_v13 }
 0x233   : > { %1705 = vrot.lane.b32.xlu2 %v3224_v51, %s2657_s26 }
 0x235   : > { %1932 = vrot.lane.b32.xlu1 %v3329_v25, %s2658_s27  ;;  %v1466_v8 = vpop.permute.xlu2 %1465  ;;  %v1564_v25 = vld [vmem:[#allocation2 + $0xb0] sm:$0xff] }
 0x236   : > { %2125 = vrot.lane.b32.xlu0 %v3403_v7, %s2659_s28  ;;  %1541 = vst.msk [vmem:[#allocation3 + $0x54] sm:$0xf] %vm1519_vm7, %v1466_v8  ;;  %v1596_v36 = vpack.c.bf16 %v1564_v25, %v1564_v25 }
 0x237   : > { %v1458_v57 = vpop.permute.xlu1 %1457 }
 0x238   : > { %1537 = vst.msk [vmem:[#allocation3 + $0x44] sm:$0xf] %vm1519_vm7, %v1458_v57  ;;  %v1462_v12 = vpop.permute.xlu0 %1461  ;;  %v1607_v57 = vpack.c.bf16 %v1575_v60, %v1575_v60 }
 0x239   : > { %1539 = vst.msk [vmem:[#allocation3 + $0x4c] sm:$0xf] %vm1519_vm7, %v1462_v12  ;;  %v1785_v12 = vld [vmem:[#allocation2 + $0x81] sm:$0xff] }
 0x23b   : > { %1900 = vrot.lane.b32.xlu2 %v1823_v1, %s2658_s27 }
 0x23d   : > { %2155 = vrot.lane.b32.xlu1 %v3460_v44, %s2659_s28  ;;  %v1472_v51 = vpop.permute.xlu2 %1471 }
 0x23e   : > { %1669 = vrot.lane.b32.xlu0 %v1595_v21, %s2657_s26  ;;  %1544 = vst.msk [vmem:[#allocation3 + $0x60] sm:$0xf] %vm1519_vm7, %v1472_v51  ;;  %v2043_v21 = vpack.c.bf16 %v2011_v17, %v2011_v17  ;;  %v1796_v17 = vld [vmem:[#allocation2 + $0x109] sm:$0xff] }
 0x23f   : > { %v1464_v7 = vpop.permute.xlu1 %1463 }
 0x240   : > { %1540 = vst.msk [vmem:[#allocation3 + $0x50] sm:$0xf] %vm1519_vm7, %v1464_v7  ;;  %v1468_v26 = vpop.permute.xlu0 %1467  ;;  %v1817_v7 = vpack.c.bf16 %v1785_v12, %v1785_v12 }
 0x241   : > { %1542 = vst.msk [vmem:[#allocation3 + $0x58] sm:$0xf] %vm1519_vm7, %v1468_v26 }
 0x243   : > { %2123 = vrot.lane.b32.xlu2 %v3381_v29, %s2659_s28 }
 0x245   : > { %1671 = vrot.lane.b32.xlu1 %v1596_v36, %s2657_s26  ;;  %v1478_v44 = vpop.permute.xlu2 %1477 }
 0x246   : > { %1703 = vrot.lane.b32.xlu0 %v1612_v52, %s2657_s26  ;;  %1547 = vst.msk [vmem:[#allocation3 + $0x6c] sm:$0xf] %vm1519_vm7, %v1478_v44  ;;  %v1832_v52 = vpack.c.bf16 %v1800_v35, %v1800_v35  ;;  %v1784_v44 = vld [vmem:[#allocation2 + $0x79] sm:$0xff] }
 0x247   : > { %v1470_v22 = vpop.permute.xlu1 %1469 }
 0x248   : > { %1543 = vst.msk [vmem:[#allocation3 + $0x5c] sm:$0xf] %vm1519_vm7, %v1470_v22  ;;  %v1474_v54 = vpop.permute.xlu0 %1473 }
 0x249   : > { %1545 = vst.msk [vmem:[#allocation3 + $0x64] sm:$0xf] %vm1519_vm7, %v1474_v54  ;;  %v2026_v54 = vld [vmem:[#allocation2 + $0x142] sm:$0xff] }
 0x24b   : > { %2157 = vrot.lane.b32.xlu2 %v3442_v50, %s2659_s28 }
 0x24d   : > { %1894 = vrot.lane.b32.xlu1 %v1820_v0, %s2658_s27  ;;  %v1484_v29 = vpop.permute.xlu2 %1483  ;;  %v1816_v0 = vpack.c.bf16 %v1784_v44, %v1784_v44  ;;  %v1781_v44 = vld [vmem:[#allocation2 + $0x51] sm:$0xff] }
 0x24e   : > { %1926 = vrot.lane.b32.xlu0 %v3315_v28, %s2658_s27  ;;  %1550 = vst.msk [vmem:[#allocation3 + $0x78] sm:$0xf] %vm1519_vm7, %v1484_v29  ;;  %v2029_v28 = vld [vmem:[#allocation2 + $0x16a] sm:$0xff] }
 0x24f   : > { %v1476_v20 = vpop.permute.xlu1 %1475  ;;  %v2061_v49 = vpack.c.bf16 %v2029_v28, %v2029_v28  ;;  %v1833_v28 = vpack.c.bf16 %v1801_v46, %v1801_v46  ;;  %v1570_v46 = vld [vmem:[#allocation2 + $0xf8] sm:$0xff] }
 0x250   : > { %1546 = vst.msk [vmem:[#allocation3 + $0x68] sm:$0xf] %vm1519_vm7, %v1476_v20  ;;  %v1480_v27 = vpop.permute.xlu0 %1479  ;;  %v2058_v20 = vpack.c.bf16 %v2026_v54, %v2026_v54  ;;  %v1569_v54 = vld [vmem:[#allocation2 + $0xf0] sm:$0xff] }
 0x251   : > { %1548 = vst.msk [vmem:[#allocation3 + $0x70] sm:$0xf] %vm1519_vm7, %v1480_v27 }
 0x253   : > { %1701 = vrot.lane.b32.xlu2 %v1611_v14, %s2657_s26  ;;  %v1573_v14 = vld [vmem:[#allocation2 + $0x120] sm:$0xff] }
 0x254   : > { %v1605_v30 = vpack.c.bf16 %v1573_v14, %v1573_v14  ;;  %v1779_v14 = vld [vmem:[#allocation2 + $0x39] sm:$0xff] }
 0x255   : > { %1928 = vrot.lane.b32.xlu1 %v3337_v24, %s2658_s27  ;;  %v1652_v50 = vpop.permute.xlu2 %1651 }
 0x256   : > { %2121 = vrot.lane.b32.xlu0 %v2046_v40, %s2659_s28  ;;  %1747 = vst.msk [vmem:[#allocation3 + $0x4] sm:$0xf] %vm1745_vm8, %v1652_v50  ;;  %v1782_v50 = vld [vmem:[#allocation2 + $0x61] sm:$0xff] }
 0x257   : > { %v1482_v43 = vpop.permute.xlu1 %1481 }
 0x258   : > { %1549 = vst.msk [vmem:[#allocation3 + $0x74] sm:$0xf] %vm1519_vm7, %v1482_v43  ;;  %v1486_v41 = vpop.permute.xlu0 %1485 }
 0x259   : > { %1551 = vst.msk [vmem:[#allocation3 + $0x7c] sm:$0xf] %vm1519_vm7, %v1486_v41 }
 0x25b   : > { %1896 = vrot.lane.b32.xlu2 %v3266_v59, %s2658_s27 }
 0x25d   : > { %2151 = vrot.lane.b32.xlu1 %v2061_v49, %s2659_s28  ;;  %v1658_v24 = vpop.permute.xlu2 %1657  ;;  %v1814_v49 = vpack.c.bf16 %v1782_v50, %v1782_v50 }
 0x25e   : > { %1665 = vrot.lane.b32.xlu0 %v1593_v55, %s2657_s26  ;;  %1750 = vst.msk [vmem:[#allocation3 + $0x10] sm:$0xf] %vm1745_vm8, %v1658_v24  ;;  %v1783_v55 = vld [vmem:[#allocation2 + $0x69] sm:$0xff] }
 0x25f   : > { %v1650_v58 = vpop.permute.xlu1 %1649  ;;  %v1815_v4 = vpack.c.bf16 %v1783_v55, %v1783_v55 }
 0x260   : > { %1746 = vst.msk [vmem:[#allocation3] sm:$0xf] %vm1745_vm8, %v1650_v58  ;;  %v1654_v5 = vpop.permute.xlu0 %1653 }
 0x261   : > { %1748 = vst.msk [vmem:[#allocation3 + $0x8] sm:$0xf] %vm1745_vm8, %v1654_v5  ;;  %v1831_v5 = vpack.c.bf16 %v1799_v56, %v1799_v56 }
 0x263   : > { %2119 = vrot.lane.b32.xlu2 %v3390_v42, %s2659_s28 }
 0x265   : > { %1667 = vrot.lane.b32.xlu1 %v1594_v31, %s2657_s26  ;;  %v1664_v59 = vpop.permute.xlu2 %1663  ;;  %v1574_v31 = vld [vmem:[#allocation2 + $0x128] sm:$0xff] }
 0x266   : > { %1699 = vrot.lane.b32.xlu0 %v1610_v6, %s2657_s26  ;;  %1753 = vst.msk [vmem:[#allocation3 + $0x1c] sm:$0xf] %vm1745_vm8, %v1664_v59 }
 0x267   : > { %v1656_v62 = vpop.permute.xlu1 %1655 }
 0x268   : > { %1749 = vst.msk [vmem:[#allocation3 + $0xc] sm:$0xf] %vm1745_vm8, %v1656_v62  ;;  %v1660_v45 = vpop.permute.xlu0 %1659  ;;  %v1606_v62 = vpack.c.bf16 %v1574_v31, %v1574_v31 }
 0x269   : > { %1751 = vst.msk [vmem:[#allocation3 + $0x14] sm:$0xf] %vm1745_vm8, %v1660_v45 }
 0x26b   : > { %2153 = vrot.lane.b32.xlu2 %v3440_v16, %s2659_s28 }
 0x26d   : > { %1890 = vrot.lane.b32.xlu1 %v1818_v15, %s2658_s27  ;;  %v1710_v42 = vpop.permute.xlu2 %1709  ;;  %v2055_v15 = vpack.c.bf16 %v2023_v39, %v2023_v39  ;;  %v2004_v39 = vld [vmem:[#allocation2 + $0x3a] sm:$0xff] }
 0x26e   : > { %1922 = vrot.lane.b32.xlu0 %v3325_v23, %s2658_s27  ;;  %1776 = vst.msk [vmem:[#allocation3 + $0x78] sm:$0xf] %vm1745_vm8, %v1710_v42 }
 0x26f   : > { %v1662_v34 = vpop.permute.xlu1 %1661 }
 0x270   : > { %1752 = vst.msk [vmem:[#allocation3 + $0x18] sm:$0xf] %vm1745_vm8, %v1662_v34  ;;  %v1678_v32 = vpop.permute.xlu0 %1677  ;;  %v1572_v34 = vld [vmem:[#allocation2 + $0x110] sm:$0xff] }
 0x271   : > { %1760 = vst.msk [vmem:[#allocation3 + $0x38] sm:$0xf] %vm1745_vm8, %v1678_v32 }
 0x273   : > { %1697 = vrot.lane.b32.xlu2 %v1609_v19, %s2657_s26 }
 0x275   : > { %1924 = vrot.lane.b32.xlu1 %v3306_v18, %s2658_s27  ;;  %v1905_v16 = vpop.permute.xlu2 %1904 }
 0x276   : > { %2117 = vrot.lane.b32.xlu0 %v3368_v63, %s2659_s28  ;;  %v1576_v63 = vld [vmem:[#allocation2 + $0x140] sm:$0xff] }
 0x277   : > { %v1680_v23 = vpop.permute.xlu1 %1679  ;;  %v1608_v25 = vpack.c.bf16 %v1576_v63, %v1576_v63 }
 0x278   : > { %1761 = vst.msk [vmem:[#allocation3 + $0x3c] sm:$0xf] %vm1745_vm8, %v1680_v23  ;;  %v1712_v8 = vpop.permute.xlu0 %1711  ;;  %v1604_v23 = vpack.c.bf16 %v1572_v34, %v1572_v34  ;;  %v1795_v34 = vld [vmem:[#allocation2 + $0xf9] sm:$0xff] }
 0x279   : > { %1777 = vst.msk [vmem:[#allocation3 + $0x7c] sm:$0xf] %vm1745_vm8, %v1712_v8 }
 0x27a   : > { %1986 = vst.msk [vmem:[#allocation3 + $0x3c] sm:$0xf] %vm1970_vm9, %v1905_v16 }
 0x27b   : > { %1892 = vrot.lane.b32.xlu2 %v1819_v47, %s2658_s27  ;;  %v1780_v47 = vld [vmem:[#allocation2 + $0x49] sm:$0xff] }
 0x27d   : > { %2147 = vrot.lane.b32.xlu1 %v3428_v9, %s2659_s28  ;;  %v2128_v18 = vpop.permute.xlu2 %2127 }
 0x27e   : > { %1693 = vrot.lane.b32.xlu0 %v1607_v57, %s2657_s26 }
 0x27f   : > { %v1903_v1 = vpop.permute.xlu1 %1902 }
 0x280   : > { %1985 = vst.msk [vmem:[#allocation3 + $0x38] sm:$0xf] %vm1970_vm9, %v1903_v1  ;;  %v1935_v51 = vpop.permute.xlu0 %1934  ;;  %v1812_v1 = vpack.c.bf16 %v1780_v47, %v1780_v47 }
 0x281   : > { %2001 = vst.msk [vmem:[#allocation3 + $0x78] sm:$0xf] %vm1970_vm9, %v1935_v51 }
 0x282   : > { %2210 = vst.msk [vmem:[#allocation3 + $0x38] sm:$0xf] %vm2195_vm10, %v2128_v18 }
 0x283   : > { %2115 = vrot.lane.b32.xlu2 %v2043_v21, %s2659_s28  ;;  %v1828_v21 = vpack.c.bf16 %v1796_v17, %v1796_v17 }
 0x285   : > { %1695 = vrot.lane.b32.xlu1 %v1608_v25, %s2657_s26  ;;  %v2162_v9 = vpop.permute.xlu2 %2161  ;;  %v1797_v25 = vld [vmem:[#allocation2 + $0x111] sm:$0xff] }
 0x286   : > { %1888 = vrot.lane.b32.xlu0 %v1817_v7, %s2658_s27 }
 0x287   : > { %v1937_v26 = vpop.permute.xlu1 %1936 }
 0x288   : > { %2002 = vst.msk [vmem:[#allocation3 + $0x7c] sm:$0xf] %vm1970_vm9, %v1937_v26  ;;  %v2130_v36 = vpop.permute.xlu0 %2129 }
 0x289   : > { %2211 = vst.msk [vmem:[#allocation3 + $0x3c] sm:$0xf] %vm2195_vm10, %v2130_v36  ;;  %v1829_v36 = vpack.c.bf16 %v1797_v25, %v1797_v25 }
 0x28a   : > { %2227 = vst.msk [vmem:[#allocation3 + $0x7c] sm:$0xf] %vm2195_vm10, %v2162_v9  ;;  %v2006_v9 = vld [vmem:[#allocation2 + $0x52] sm:$0xff] }
 0x28b   : > { %2149 = vrot.lane.b32.xlu2 %v3451_v10, %s2659_s28 }
 0x28d   : > { %1918 = vrot.lane.b32.xlu1 %v1832_v52, %s2658_s27  ;;  %v1706_v53 = vpop.permute.xlu2 %1705  ;;  %v2038_v52 = vpack.c.bf16 %v2006_v9, %v2006_v9 }
 0x28e   : > { %2111 = vrot.lane.b32.xlu0 %v3356_v48, %s2659_s28  ;;  %1774 = vst.msk [vmem:[#allocation3 + $0x70] sm:$0xf] %vm1745_vm8, %v1706_v53 }
 0x28f   : > { %v2160_v22 = vpop.permute.xlu1 %2159 }
 0x290   : > { %2226 = vst.msk [vmem:[#allocation3 + $0x78] sm:$0xf] %vm2195_vm10, %v2160_v22  ;;  %v1674_v3 = vpop.permute.xlu0 %1673  ;;  %v2614_v29 = vld [vmem:[#allocation3 + $0x38] sm:$0xff] }
 0x291   : > { %1758 = vst.msk [vmem:[#allocation3 + $0x30] sm:$0xf] %vm1745_vm8, %v1674_v3  ;;  %v2373_v10 = vsel %vm2347_vm11, %v2614_v29, 0  ;;  %v1601_v29 = vpack.c.bf16 %v1569_v54, %v1569_v54 }
 0x292   : > { %2399 = vmatpush.bf16.xpose.msra.mxu0 %v2373_v10  ;;  %v2005_v10 = vld [vmem:[#allocation2 + $0x4a] sm:$0xff] }
 0x293   : > { %1886 = vrot.lane.b32.xlu2 %v1816_v0, %s2658_s27  ;;  %v1813_v0 = vpack.c.bf16 %v1781_v44, %v1781_v44 }
 0x295   : > { %2113 = vrot.lane.b32.xlu1 %v3377_v11, %s2659_s28  ;;  %v1901_v48 = vpop.permute.xlu2 %1900 }
 0x296   : > { %2145 = vrot.lane.b32.xlu0 %v2058_v20, %s2659_s28 }
 0x297   : > { %v1676_v27 = vpop.permute.xlu1 %1675  ;;  %v2622_v40 = vld [vmem:[#allocation3 + $0x78] sm:$0xff] }
 0x298   : > { %1759 = vst.msk [vmem:[#allocation3 + $0x34] sm:$0xf] %vm1745_vm8, %v1676_v27  ;;  %v1708_v43 = vpop.permute.xlu0 %1707  ;;  %v2397_v41 = vsel %vm2347_vm11, %v2622_v40, 0  ;;  %v2037_v27 = vpack.c.bf16 %v2005_v10, %v2005_v10 }
 0x299   : > { %1775 = vst.msk [vmem:[#allocation3 + $0x74] sm:$0xf] %vm1745_vm8, %v1708_v43  ;;  %2412 = vmatpush.bf16.xpose.msra.mxu1 %v2397_v41 }
 0x29a   : > { %1984 = vst.msk [vmem:[#allocation3 + $0x34] sm:$0xf] %vm1970_vm9, %v1901_v48 }
 0x29b   : > { %1920 = vrot.lane.b32.xlu2 %v1833_v28, %s2658_s27  ;;  %v1602_v28 = vpack.c.bf16 %v1570_v46, %v1570_v46 }
 0x29d   : > { %1689 = vrot.lane.b32.xlu1 %v1605_v30, %s2657_s26  ;;  %v2124_v11 = vpop.permute.xlu2 %2123  ;;  %v1811_v30 = vpack.c.bf16 %v1779_v14, %v1779_v14 }
 0x29e   : > { %1882 = vrot.lane.b32.xlu0 %v1814_v49, %s2658_s27  ;;  %v1794_v49 = vld [vmem:[#allocation2 + $0xf1] sm:$0xff] }
 0x29f   : > { %v1899_v24 = vpop.permute.xlu1 %1898 }
 0x2a0   : > { %1983 = vst.msk [vmem:[#allocation3 + $0x30] sm:$0xf] %vm1970_vm9, %v1899_v24  ;;  %v1931_v58 = vpop.permute.xlu0 %1930  ;;  %v2003_v24 = vld [vmem:[#allocation2 + $0x32] sm:$0xff] }
 0x2a1   : > { %1999 = vst.msk [vmem:[#allocation3 + $0x70] sm:$0xf] %vm1970_vm9, %v1931_v58  ;;  %v2035_v31 = vpack.c.bf16 %v2003_v24, %v2003_v24 }
 0x2a2   : > { %2208 = vst.msk [vmem:[#allocation3 + $0x30] sm:$0xf] %vm2195_vm10, %v2124_v11 }
 0x2a3   : > { %2143 = vrot.lane.b32.xlu2 %v3436_v33, %s2659_s28  ;;  %v1798_v33 = vld [vmem:[#allocation2 + $0x121] sm:$0xff] }
 0x2a4   : > { %v1830_v19 = vpack.c.bf16 %v1798_v33, %v1798_v33 }
 0x2a5   : > { %1884 = vrot.lane.b32.xlu1 %v1815_v4, %s2658_s27  ;;  %v2158_v6 = vpop.permute.xlu2 %2157  ;;  %v1826_v4 = vpack.c.bf16 %v1794_v49, %v1794_v49 }
 0x2a6   : > { %1916 = vrot.lane.b32.xlu0 %v1831_v5, %s2658_s27 }
 0x2a7   : > { %v1933_v59 = vpop.permute.xlu1 %1932 }
 0x2a8   : > { %2000 = vst.msk [vmem:[#allocation3 + $0x74] sm:$0xf] %vm1970_vm9, %v1933_v59  ;;  %v2126_v45 = vpop.permute.xlu0 %2125 }
 0x2a9   : > { %2209 = vst.msk [vmem:[#allocation3 + $0x34] sm:$0xf] %vm2195_vm10, %v2126_v45  ;;  %v2020_v45 = vld [vmem:[#allocation2 + $0xfa] sm:$0xff] }
 0x2aa   : > { %2225 = vst.msk [vmem:[#allocation3 + $0x74] sm:$0xf] %vm2195_vm10, %v2158_v6  ;;  %v1778_v6 = vld [vmem:[#allocation2 + $0x31] sm:$0xff] }
 0x2ab   : > { %1691 = vrot.lane.b32.xlu2 %v1606_v62, %s2657_s26 }
 0x2ad   : > { %2107 = vrot.lane.b32.xlu1 %v3364_v61, %s2659_s28  ;;  %v1702_v38 = vpop.permute.xlu2 %1701  ;;  %v2008_v61 = vld [vmem:[#allocation2 + $0x6a] sm:$0xff] }
 0x2ae   : > { %2139 = vrot.lane.b32.xlu0 %v2055_v15, %s2659_s28  ;;  %1772 = vst.msk [vmem:[#allocation3 + $0x68] sm:$0xf] %vm1745_vm8, %v1702_v38  ;;  %v2040_v18 = vpack.c.bf16 %v2008_v61, %v2008_v61  ;;  %v1810_v15 = vpack.c.bf16 %v1778_v6, %v1778_v6  ;;  %v2036_v38 = vpack.c.bf16 %v2004_v39, %v2004_v39 }
 0x2af   : > { %v2156_v42 = vpop.permute.xlu1 %2155 }
 0x2b0   : > { %2224 = vst.msk [vmem:[#allocation3 + $0x70] sm:$0xf] %vm2195_vm10, %v2156_v42  ;;  %v1670_v32 = vpop.permute.xlu0 %1669  ;;  %v2613_v13 = vld [vmem:[#allocation3 + $0x30] sm:$0xff]  ;;  %v2052_v42 = vpack.c.bf16 %v2020_v45, %v2020_v45 }
 0x2b1   : > { %1756 = vst.msk [vmem:[#allocation3 + $0x28] sm:$0xf] %vm1745_vm8, %v1670_v32  ;;  %v2370_v16 = vsel %vm2347_vm11, %v2613_v13, 0  ;;  %v1827_v13 = vpack.c.bf16 %v1795_v34, %v1795_v34  ;;  %v2261_v45 = vld [vmem:[%s3759_s2] sm:$0xff] }
 0x2b2   : > { %2400 = vmatpush.bf16.xpose.msra.mxu0 %v2370_v16 }
 0x2b3   : > { %1914 = vrot.lane.b32.xlu2 %v1830_v19, %s2658_s27 }
 0x2b5   : > { %2141 = vrot.lane.b32.xlu1 %v3418_v2, %s2659_s28  ;;  %v1897_v60 = vpop.permute.xlu2 %1896  ;;  %v1571_v2 = vld [vmem:[#allocation2 + $0x108] sm:$0xff] }
 0x2b6   : > { %1687 = vrot.lane.b32.xlu0 %v1604_v23, %s2657_s26  ;;  %v1603_v35 = vpack.c.bf16 %v1571_v2, %v1571_v2  ;;  %v2019_v23 = vld [vmem:[#allocation2 + $0xf2] sm:$0xff] }
 0x2b7   : > { %v1672_v8 = vpop.permute.xlu1 %1671  ;;  %v2621_v57 = vld [vmem:[#allocation3 + $0x70] sm:$0xff]  ;;  %v2051_v47 = vpack.c.bf16 %v2019_v23, %v2019_v23 }
 0x2b8   : > { %1757 = vst.msk [vmem:[#allocation3 + $0x2c] sm:$0xf] %vm1745_vm8, %v1672_v8  ;;  %v1704_v63 = vpop.permute.xlu0 %1703  ;;  %v2394_v12 = vsel %vm2347_vm11, %v2621_v57, 0 }
 0x2b9   : > { %1773 = vst.msk [vmem:[#allocation3 + $0x6c] sm:$0xf] %vm1745_vm8, %v1704_v63  ;;  %2413 = vmatpush.bf16.xpose.msra.mxu1 %v2394_v12 }
 0x2ba   : > { %1982 = vst.msk [vmem:[#allocation3 + $0x2c] sm:$0xf] %vm1970_vm9, %v1897_v60 }
 0x2bb   : > { %2109 = vrot.lane.b32.xlu2 %v2040_v18, %s2659_s28 }
 0x2bd   : > { %1878 = vrot.lane.b32.xlu1 %v1812_v1, %s2658_s27  ;;  %v2120_v51 = vpop.permute.xlu2 %2119 }
 0x2be   : > { %1910 = vrot.lane.b32.xlu0 %v1828_v21, %s2658_s27 }
 0x2bf   : > { %v1895_v7 = vpop.permute.xlu1 %1894 }
 0x2c0   : > { %1981 = vst.msk [vmem:[#allocation3 + $0x28] sm:$0xf] %vm1970_vm9, %v1895_v7  ;;  %v1927_v26 = vpop.permute.xlu0 %1926 }
 0x2c1   : > { %1997 = vst.msk [vmem:[#allocation3 + $0x68] sm:$0xf] %vm1970_vm9, %v1927_v26 }
 0x2c2   : > { %2206 = vst.msk [vmem:[#allocation3 + $0x28] sm:$0xf] %vm2195_vm10, %v2120_v51 }
 0x2c3   : > { %1685 = vrot.lane.b32.xlu2 %v1603_v35, %s2657_s26 }
 0x2c5   : > { %1912 = vrot.lane.b32.xlu1 %v1829_v36, %s2658_s27  ;;  %v2154_v53 = vpop.permute.xlu2 %2153 }
 0x2c6   : > { %2105 = vrot.lane.b32.xlu0 %v2038_v52, %s2659_s28 }
 0x2c7   : > { %v1929_v22 = vpop.permute.xlu1 %1928 }
 0x2c8   : > { %1998 = vst.msk [vmem:[#allocation3 + $0x6c] sm:$0xf] %vm1970_vm9, %v1929_v22  ;;  %v2122_v3 = vpop.permute.xlu0 %2121 }
 0x2c9   : > { %2207 = vst.msk [vmem:[#allocation3 + $0x2c] sm:$0xf] %vm2195_vm10, %v2122_v3 }
 0x2ca   : > { %2223 = vst.msk [vmem:[#allocation3 + $0x6c] sm:$0xf] %vm2195_vm10, %v2154_v53 }
 0x2cb   : > { %1880 = vrot.lane.b32.xlu2 %v1813_v0, %s2658_s27 }
 0x2cd   : > { %2135 = vrot.lane.b32.xlu1 %v3407_v37, %s2659_s28  ;;  %v1698_v20 = vpop.permute.xlu2 %1697  ;;  %v2022_v37 = vld [vmem:[#allocation2 + $0x112] sm:$0xff] }
 0x2ce   : > { %1681 = vrot.lane.b32.xlu0 %v1601_v29, %s2657_s26  ;;  %1770 = vst.msk [vmem:[#allocation3 + $0x60] sm:$0xf] %vm1745_vm8, %v1698_v20  ;;  %v2054_v56 = vpack.c.bf16 %v2022_v37, %v2022_v37 }
 0x2cf   : > { %v2152_v48 = vpop.permute.xlu1 %2151 }
 0x2d0   : > { %2222 = vst.msk [vmem:[#allocation3 + $0x68] sm:$0xf] %vm2195_vm10, %v2152_v48  ;;  %v1666_v40 = vpop.permute.xlu0 %1665  ;;  %v2612_v50 = vld [vmem:[#allocation3 + $0x28] sm:$0xff] }
 0x2d1   : > { %1754 = vst.msk [vmem:[#allocation3 + $0x20] sm:$0xf] %vm1745_vm8, %v1666_v40  ;;  %v2367_v43 = vsel %vm2347_vm11, %v2612_v50, 0 }
 0x2d2   : > { %2401 = vmatpush.bf16.xpose.msra.mxu0 %v2367_v43 }
 0x2d3   : > { %2103 = vrot.lane.b32.xlu2 %v2037_v27, %s2659_s28 }
 0x2d5   : > { %1683 = vrot.lane.b32.xlu1 %v1602_v28, %s2657_s26  ;;  %v1893_v41 = vpop.permute.xlu2 %1892 }
 0x2d6   : > { %1876 = vrot.lane.b32.xlu0 %v1811_v30, %s2658_s27 }
 0x2d7   : > { %v1668_v11 = vpop.permute.xlu1 %1667  ;;  %v2620_v55 = vld [vmem:[#allocation3 + $0x68] sm:$0xff] }
 0x2d8   : > { %1755 = vst.msk [vmem:[#allocation3 + $0x24] sm:$0xf] %vm1745_vm8, %v1668_v11  ;;  %v1700_v58 = vpop.permute.xlu0 %1699  ;;  %v2391_v5 = vsel %vm2347_vm11, %v2620_v55, 0 }
 0x2d9   : > { %1771 = vst.msk [vmem:[#allocation3 + $0x64] sm:$0xf] %vm1745_vm8, %v1700_v58  ;;  %2414 = vmatpush.bf16.xpose.msra.mxu1 %v2391_v5 }
 0x2da   : > { %1980 = vst.msk [vmem:[#allocation3 + $0x24] sm:$0xf] %vm1970_vm9, %v1893_v41 }
 0x2db   : > { %2137 = vrot.lane.b32.xlu2 %v2054_v56, %s2659_s28 }
 0x2dd   : > { %1906 = vrot.lane.b32.xlu1 %v1826_v4, %s2658_s27  ;;  %v2116_v59 = vpop.permute.xlu2 %2115 }
 0x2de   : > { %2099 = vrot.lane.b32.xlu0 %v2035_v31, %s2659_s28 }
 0x2df   : > { %v1891_v62 = vpop.permute.xlu1 %1890 }
 0x2e0   : > { %1979 = vst.msk [vmem:[#allocation3 + $0x20] sm:$0xf] %vm1970_vm9, %v1891_v62  ;;  %v1923_v33 = vpop.permute.xlu0 %1922 }
 0x2e1   : > { %1995 = vst.msk [vmem:[#allocation3 + $0x60] sm:$0xf] %vm1970_vm9, %v1923_v33 }
 0x2e2   : > { %2204 = vst.msk [vmem:[#allocation3 + $0x20] sm:$0xf] %vm2195_vm10, %v2116_v59 }
 0x2e3   : > { %1874 = vrot.lane.b32.xlu2 %v1810_v15, %s2658_s27  ;;  %v2660_v15 = vmov 0  }
 0x2e4   : > { %2641 = vset.pattern.permute.xlu1 %v2660_v15  ;;  %2642 = vset.pattern.permute.xlu0 %v2660_v15 }
 0x2e5   : > { %2101 = vrot.lane.b32.xlu1 %v2036_v38, %s2659_s28  ;;  %v2150_v19 = vpop.permute.xlu2 %2149 }
 0x2e6   : > { %2133 = vrot.lane.b32.xlu0 %v2052_v42, %s2659_s28 }
 0x2e7   : > { %v1925_v32 = vpop.permute.xlu1 %1924 }
 0x2e8   : > { %1996 = vst.msk [vmem:[#allocation3 + $0x64] sm:$0xf] %vm1970_vm9, %v1925_v32  ;;  %v2118_v16 = vpop.permute.xlu0 %2117 }
 0x2e9   : > { %2205 = vst.msk [vmem:[#allocation3 + $0x24] sm:$0xf] %vm2195_vm10, %v2118_v16 }
 0x2ea   : > { %2221 = vst.msk [vmem:[#allocation3 + $0x64] sm:$0xf] %vm2195_vm10, %v2150_v19 }
 0x2eb   : > { %1908 = vrot.lane.b32.xlu2 %v1827_v13, %s2658_s27 }
 0x2ed   : > { %v1887_v61 = vpop.permute.xlu2 %1886  ;;  %2264 = vperm.xlu1 %2641, %v2261_v45  }
 0x2ee   : > { %1977 = vst.msk [vmem:[#allocation3 + $0x18] sm:$0xf] %vm1970_vm9, %v1887_v61  ;;  %v2228_v61 = vld [vmem:[%s3758_s1] sm:$0xf] }
 0x2ef   : > { %v2148_v60 = vpop.permute.xlu1 %2147 }
 0x2f0   : > { %2220 = vst.msk [vmem:[#allocation3 + $0x60] sm:$0xf] %vm2195_vm10, %v2148_v60  ;;  %v1694_v8 = vpop.permute.xlu0 %1693  ;;  %v2611_v57 = vld [vmem:[#allocation3 + $0x20] sm:$0xff] }
 0x2f1   : > { %1768 = vst.msk [vmem:[#allocation3 + $0x58] sm:$0xf] %vm1745_vm8, %v1694_v8  ;;  %v2364_v17 = vsel %vm2347_vm11, %v2611_v57, 0 }
 0x2f2   : > { %2402 = vmatpush.bf16.xpose.msra.mxu0 %v2364_v17 }
 0x2f3   : > { %2131 = vrot.lane.b32.xlu2 %v2051_v47, %s2659_s28 }
 0x2f5   : > { %v1921_v18 = vpop.permute.xlu2 %1920 }
 0x2f7   : > { %v1696_v63 = vpop.permute.xlu1 %1695  ;;  %v2619_v1 = vld [vmem:[#allocation3 + $0x60] sm:$0xff] }
 0x2f8   : > { %1769 = vst.msk [vmem:[#allocation3 + $0x5c] sm:$0xf] %vm1745_vm8, %v1696_v63  ;;  %v1889_v12 = vpop.permute.xlu0 %1888  ;;  %v2388_v21 = vsel %vm2347_vm11, %v2619_v1, 0 }
 0x2f9   : > { %1978 = vst.msk [vmem:[#allocation3 + $0x1c] sm:$0xf] %vm1970_vm9, %v1889_v12  ;;  %2415 = vmatpush.bf16.xpose.msra.mxu1 %v2388_v21 }
 0x2fa   : > { %1994 = vst.msk [vmem:[#allocation3 + $0x5c] sm:$0xf] %vm1970_vm9, %v1921_v18 }
 0x2fd   : > { %v2144_v2 = vpop.permute.xlu2 %2143 }
 0x2ff   : > { %v1919_v51 = vpop.permute.xlu1 %1918 }
 0x300   : > { %1993 = vst.msk [vmem:[#allocation3 + $0x58] sm:$0xf] %vm1970_vm9, %v1919_v51  ;;  %v2112_v25 = vpop.permute.xlu0 %2111 }
 0x301   : > { %2202 = vst.msk [vmem:[#allocation3 + $0x18] sm:$0xf] %vm2195_vm10, %v2112_v25 }
 0x302   : > { %2218 = vst.msk [vmem:[#allocation3 + $0x58] sm:$0xf] %vm2195_vm10, %v2144_v2 }
 0x305   : > { %v1692_v7 = vpop.permute.xlu2 %1691 }
 0x306   : > { %1767 = vst.msk [vmem:[#allocation3 + $0x54] sm:$0xf] %vm1745_vm8, %v1692_v7 }
 0x307   : > { %v2114_v9 = vpop.permute.xlu1 %2113 }
 0x308   : > { %2203 = vst.msk [vmem:[#allocation3 + $0x1c] sm:$0xf] %vm2195_vm10, %v2114_v9  ;;  %v2146_v35 = vpop.permute.xlu0 %2145 }
 0x309   : > { %2219 = vst.msk [vmem:[#allocation3 + $0x5c] sm:$0xf] %vm2195_vm10, %v2146_v35 }
 0x30d   : > { %v1915_v26 = vpop.permute.xlu2 %1914 }
 0x30f   : > { %v1690_v36 = vpop.permute.xlu1 %1689  ;;  %v2610_v52 = vld [vmem:[#allocation3 + $0x18] sm:$0xff] }
 0x310   : > { %1766 = vst.msk [vmem:[#allocation3 + $0x50] sm:$0xf] %vm1745_vm8, %v1690_v36  ;;  %v1883_v44 = vpop.permute.xlu0 %1882  ;;  %v2618_v53 = vld [vmem:[#allocation3 + $0x58] sm:$0xff]  ;;  %v2361_v22 = vsel %vm2347_vm11, %v2610_v52, 0 }
 0x311   : > { %1975 = vst.msk [vmem:[#allocation3 + $0x10] sm:$0xf] %vm1970_vm9, %v1883_v44  ;;  %2403 = vmatpush.bf16.xpose.msra.mxu0 %v2361_v22  ;;  %v2385_v54 = vsel %vm2347_vm11, %v2618_v53, 0 }
 0x312   : > { %1991 = vst.msk [vmem:[#allocation3 + $0x50] sm:$0xf] %vm1970_vm9, %v1915_v26  ;;  %2416 = vmatpush.bf16.xpose.msra.mxu1 %v2385_v54 }
 0x315   : > { %v2110_v0 = vpop.permute.xlu2 %2109 }
 0x317   : > { %v1885_v3 = vpop.permute.xlu1 %1884 }
 0x318   : > { %1976 = vst.msk [vmem:[#allocation3 + $0x14] sm:$0xf] %vm1970_vm9, %v1885_v3  ;;  %v1917_v29 = vpop.permute.xlu0 %1916 }
 0x319   : > { %1992 = vst.msk [vmem:[#allocation3 + $0x54] sm:$0xf] %vm1970_vm9, %v1917_v29 }
 0x31a   : > { %2201 = vst.msk [vmem:[#allocation3 + $0x14] sm:$0xf] %vm2195_vm10, %v2110_v0 }
 0x31d   : > { %v1686_v10 = vpop.permute.xlu2 %1685 }
 0x31e   : > { %1764 = vst.msk [vmem:[#allocation3 + $0x48] sm:$0xf] %vm1745_vm8, %v1686_v10 }
 0x31f   : > { %v2108_v20 = vpop.permute.xlu1 %2107 }
 0x320   : > { %2200 = vst.msk [vmem:[#allocation3 + $0x10] sm:$0xf] %vm2195_vm10, %v2108_v20  ;;  %v2140_v46 = vpop.permute.xlu0 %2139 }
 0x321   : > { %2216 = vst.msk [vmem:[#allocation3 + $0x50] sm:$0xf] %vm2195_vm10, %v2140_v46 }
 0x325   : > { %v1881_v48 = vpop.permute.xlu2 %1880 }
 0x326   : > { %1974 = vst.msk [vmem:[#allocation3 + $0xc] sm:$0xf] %vm1970_vm9, %v1881_v48 }
 0x327   : > { %v2142_v14 = vpop.permute.xlu1 %2141  ;;  %v2609_v27 = vld [vmem:[#allocation3 + $0x10] sm:$0xff] }
 0x328   : > { %2217 = vst.msk [vmem:[#allocation3 + $0x54] sm:$0xf] %vm2195_vm10, %v2142_v14  ;;  %v1688_v40 = vpop.permute.xlu0 %1687  ;;  %v2358_v50 = vsel %vm2347_vm11, %v2609_v27, 0 }
 0x329   : > { %1765 = vst.msk [vmem:[#allocation3 + $0x4c] sm:$0xf] %vm1745_vm8, %v1688_v40  ;;  %2404 = vmatpush.bf16.xpose.msra.mxu0 %v2358_v50 }
 0x32d   : > { %v2104_v28 = vpop.permute.xlu2 %2103 }
 0x32f   : > { %v1879_v43 = vpop.permute.xlu1 %1878  ;;  %v2617_v30 = vld [vmem:[#allocation3 + $0x50] sm:$0xff] }
 0x330   : > { %1973 = vst.msk [vmem:[#allocation3 + $0x8] sm:$0xf] %vm1970_vm9, %v1879_v43  ;;  %v1911_v37 = vpop.permute.xlu0 %1910  ;;  %v2382_v41 = vsel %vm2347_vm11, %v2617_v30, 0 }
 0x331   : > { %1989 = vst.msk [vmem:[#allocation3 + $0x48] sm:$0xf] %vm1970_vm9, %v1911_v37  ;;  %2417 = vmatpush.bf16.xpose.msra.mxu1 %v2382_v41 }
 0x332   : > { %2198 = vst.msk [vmem:[#allocation3 + $0x8] sm:$0xf] %vm2195_vm10, %v2104_v28 }
 0x335   : > { %v2138_v49 = vpop.permute.xlu2 %2137 }
 0x337   : > { %v1913_v11 = vpop.permute.xlu1 %1912 }
 0x338   : > { %1990 = vst.msk [vmem:[#allocation3 + $0x4c] sm:$0xf] %vm1970_vm9, %v1913_v11  ;;  %v2106_v55 = vpop.permute.xlu0 %2105 }
 0x339   : > { %2199 = vst.msk [vmem:[#allocation3 + $0xc] sm:$0xf] %vm2195_vm10, %v2106_v55 }
 0x33a   : > { %2215 = vst.msk [vmem:[#allocation3 + $0x4c] sm:$0xf] %vm2195_vm10, %v2138_v49 }
 0x33d   : > { %v1875_v24 = vpop.permute.xlu2 %1874 }
 0x33e   : > { %1971 = vst.msk [vmem:[#allocation3] sm:$0xf] %vm1970_vm9, %v1875_v24 }
 0x33f   : > { %v2136_v56 = vpop.permute.xlu1 %2135 }
 0x340   : > { %2214 = vst.msk [vmem:[#allocation3 + $0x48] sm:$0xf] %vm2195_vm10, %v2136_v56  ;;  %v1682_v58 = vpop.permute.xlu0 %1681  ;;  %v2608_v4 = vld [vmem:[#allocation3 + $0x8] sm:$0xff] }
 0x341   : > { %1762 = vst.msk [vmem:[#allocation3 + $0x40] sm:$0xf] %vm1745_vm8, %v1682_v58  ;;  %v2355_v5 = vsel %vm2347_vm11, %v2608_v4, 0 }
 0x342   : > { %2405 = vmatpush.bf16.xpose.msra.mxu0 %v2355_v5 }
 0x345   : > { %v1909_v31 = vpop.permute.xlu2 %1908 }
 0x347   : > { %v1684_v6 = vpop.permute.xlu1 %1683  ;;  %v2616_v59 = vld [vmem:[#allocation3 + $0x48] sm:$0xff] }
 0x348   : > { %1763 = vst.msk [vmem:[#allocation3 + $0x44] sm:$0xf] %vm1745_vm8, %v1684_v6  ;;  %v1877_v39 = vpop.permute.xlu0 %1876  ;;  %v2379_v62 = vsel %vm2347_vm11, %v2616_v59, 0 }
 0x349   : > { %1972 = vst.msk [vmem:[#allocation3 + $0x4] sm:$0xf] %vm1970_vm9, %v1877_v39  ;;  %2418 = vmatpush.bf16.xpose.msra.mxu1 %v2379_v62 }
 0x34a   : > { %1988 = vst.msk [vmem:[#allocation3 + $0x44] sm:$0xf] %vm1970_vm9, %v1909_v31 }
 0x34d   : > { %v2132_v38 = vpop.permute.xlu2 %2131 }
 0x34f   : > { %v1907_v33 = vpop.permute.xlu1 %1906 }
 0x350   : > { %1987 = vst.msk [vmem:[#allocation3 + $0x40] sm:$0xf] %vm1970_vm9, %v1907_v33  ;;  %v2100_v42 = vpop.permute.xlu0 %2099 }
 0x351   : > { %2196 = vst.msk [vmem:[#allocation3] sm:$0xf] %vm2195_vm10, %v2100_v42 }
 0x352   : > { %2212 = vst.msk [vmem:[#allocation3 + $0x40] sm:$0xf] %vm2195_vm10, %v2132_v38 }
 0x357   : > { %v2102_v34 = vpop.permute.xlu1 %2101 }
 0x358   : > { %2197 = vst.msk [vmem:[#allocation3 + $0x4] sm:$0xf] %vm2195_vm10, %v2102_v34  ;;  %v2134_v19 = vpop.permute.xlu0 %2133 }
 0x359   : > { %2213 = vst.msk [vmem:[#allocation3 + $0x44] sm:$0xf] %vm2195_vm10, %v2134_v19 }
 0x35f   : > { %v2607_v32 = vld [vmem:[#allocation3] sm:$0xff]  ;;  %v2265_v60 = vpop.permute.xlu1 %2264 }
 0x360   : > { %v2615_v13 = vld [vmem:[#allocation3 + $0x40] sm:$0xff]  ;;  %v2352_v16 = vsel %vm2347_vm11, %v2607_v32, 0 }
 0x361   : > { %2406 = vmatpush.bf16.xpose.msra.mxu0 %v2352_v16  ;;  %v2376_v23 = vsel %vm2347_vm11, %v2615_v13, 0 }
 0x362   : > { %2419 = vmatpush.bf16.xpose.msra.mxu1 %v2376_v23 }
 0x368   : > { %2601 = vmatmul.msk.bf16.vlgmr.msra.gmra.mxu0 %vm2347_vm11, %v2228_v61 }
 0x369   : > { %2602 = vmatmul.msk.bf16.vlgmr.msra.gmra.mxu1 %vm2347_vm11, %v2228_v61 }
 0x3e5   : > { %v2408_v47 = vpop.f32.mrf.mxu0 }
 0x3e6   : > { %v2421_v8 = vpop.f32.mrf.mxu1  ;;  %v2409_v57 = vadd.f32 %v2408_v47, %v2265_v60 }
 0x3e7   : > { %v2422_v17 = vadd.f32 %v2421_v8, %v2265_v60 }
 0x3e8   : > { %v2425_v18 = vmax.f32 %v2409_v57, 0.0 }
 0x3e9   : > { %v2426_v63 = vmax.f32 %v2422_v17, 0.0 }
 0x3ea   : > { %2427 = vst [vmem:[%s204_s10] sm:$0xff] %v2425_v18  ;;  %v2434_v1 = vmul.f32 %v2425_v18, %v2425_v18 }
 0x3eb   : > { %2428 = vst [vmem:[%s204_s10 + $0x8] sm:$0xff] %v2426_v63  ;;  %v2435_v12 = vmul.f32 %v2426_v63, %v2426_v63  ;;  %v2429_v21 = vadd.f32 %v2426_v63, %v2425_v18 }
 0x3ed   : > { %v2410_v2 = vpop.f32.mrf.mxu0  ;;  %2430 = vadd.xlane.f32.xlu2 %v2429_v21  ;;  %v2436_v51 = vadd.f32 %v2435_v12, %v2434_v1 }
 0x3ee   : > { %v2423_v25 = vpop.f32.mrf.mxu1 }
 0x3ef   : > { %2437 = vadd.xlane.f32.xlu0 %v2436_v51 }
 0x460   : > { %v2431_v7 = vpop.xlane.xlu2 %2430 }
 0x461   : > { %2433 = vst.msk [vmem:[%s208_s14] sm:$0xff] %vm2432_vm12, %v2431_v7 }
 0x462   : > { %v2438_v9 = vpop.xlane.xlu0 %2437 }
 0x463   : > { %2440 = vst.msk [vmem:[%s208_s14] sm:$0xff] %vm2439_vm13, %v2438_v9 }
 0x464 PF: > { %s15_s15 = sadd.s32 1, %s2649_s15  }
 0x465   : > { %p12_p4 = scmp.ge.s32.totalorder %s15_s15, 4  }
 0x467   :  { %14 = sbr.rel (!%p12_p4) target bundleno = 1 (0x1), region = 76 }

</bundles_post_ra>
